<compile_context>
chip_gen: v7x
topology: tpu7x:2x2x1
jax: 0.10.0
libtpu: 0.0.40
codegen_flags: <defaults>
</compile_context>

<pallas_src>
import functools

import jax
import jax.numpy as jnp
from jax.experimental import pallas as pl
from jax.experimental.pallas import tpu as pltpu


# ---- tuning knobs -----------------------------------------------------------
_TARGET_BLOCK_BYTES = 8 * 1024 * 1024   # per input block (double-buffered by Pallas)
_COL_TILE_CAP = 8 * 1024                # multiple of 128; caps reduction-axis tile
_FAST_PATH_BYTES = 1 * 1024 * 1024      # small inputs: fused XLA reduce is faster
_VMEM_LIMIT_BYTES = 32 * 1024 * 1024    # explicit scoped VMEM; safe on v5e/v6e/v7x


def _round_up(x: int, m: int) -> int:
    return ((x + m - 1) // m) * m


def _sublane_multiple(dtype) -> int:
    # Packed-sublane granularity: 8 for 32-bit, 16 for 16-bit, 32 for 8-bit.
    return max(8, 32 // jnp.dtype(dtype).itemsize)


def _fill_value(dtype):
    dtype = jnp.dtype(dtype)
    if jnp.issubdtype(dtype, jnp.floating):
        return float("-inf")
    return int(jnp.iinfo(dtype).min)


def _global_max_kernel(x_ref, o_ref, *, cols, col_tile, fill, mask_cols):
    """Max-accumulate one (row_tile, col_tile) block into the resident output."""
    k = pl.program_id(1)  # reduction (column) axis, marked "arbitrary"

    @pl.when(k == 0)
    def _init():
        o_ref[...] = jnp.full(o_ref.shape, fill, dtype=o_ref.dtype)

    def _accumulate(blk):
        o_ref[...] = jnp.maximum(o_ref[...], jnp.max(blk, axis=-1, keepdims=True))

    if mask_cols:
        # Only the final column block extends past H*W; pay for the mask
        # (iota + compare + select) on that one step only.
        last = pl.num_programs(1) - 1

        @pl.when(k == last)
        def _masked_step():
            blk = x_ref[...]
            col_idx = jax.lax.broadcasted_iota(jnp.int32, blk.shape, 1) + k * col_tile
            _accumulate(jnp.where(col_idx < cols, blk, jnp.asarray(fill, blk.dtype)))

        @pl.when(k != last)
        def _plain_step():
            _accumulate(x_ref[...])
    else:
        _accumulate(x_ref[...])


def adaptive_max_pool2d_1(x: jax.Array) -> jax.Array:
    """Equivalent of nn.AdaptiveMaxPool2d(1) forward for NCHW input."""
    N, C, H, W = x.shape
    rows, cols = N * C, H * W
    itemsize = jnp.dtype(x.dtype).itemsize
    sublane = _sublane_multiple(x.dtype)

    # Fast path: small inputs (or too few rows for one aligned sublane tile) —
    # pallas_call launch + pipeline prologue would dominate; a fused XLA
    # minor-dim reduce is already near the HBM roofline there.
    if rows * cols * itemsize <= _FAST_PATH_BYTES or rows < sublane:
        return jnp.max(x, axis=(2, 3), keepdims=True)

    x2d = x.reshape(rows, cols)

    # Column tile: whole reduction axis when it fits, otherwise balanced
    # 128-multiple tiles (avoids one full block + a nearly-empty ragged one).
    if cols <= _COL_TILE_CAP:
        col_tile = cols
    else:
        n_col_blocks = pl.cdiv(cols, _COL_TILE_CAP)
        col_tile = _round_up(pl.cdiv(cols, n_col_blocks), 128)

    # Row tile: fill the VMEM budget using the *lane-padded* column width
    # (the VMEM tile pads the lane dim to 128), dtype-aware sublane multiple.
    col_tile_padded = _round_up(col_tile, 128)
    row_tile = _TARGET_BLOCK_BYTES // (col_tile_padded * itemsize)
    row_tile = (row_tile // sublane) * sublane
    # Keep >= 2 row blocks so the "parallel" row axis can shard across both
    # v7x TensorCores (no-op on single-TC v5e/v6e); only the last block may be
    # ragged, and its extra output rows are masked on store because the output
    # is exactly (rows, 1).
    half_rows = _round_up(pl.cdiv(rows, 2), sublane)
    row_tile = min(row_tile, half_rows, (rows // sublane) * sublane)
    row_tile = max(row_tile, sublane)

    grid = (pl.cdiv(rows, row_tile), pl.cdiv(cols, col_tile))
    mask_cols = (col_tile != cols) and (cols % col_tile != 0)
    fill = _fill_value(x.dtype)

    kernel = functools.partial(
        _global_max_kernel,
        cols=cols, col_tile=col_tile, fill=fill, mask_cols=mask_cols)

    out2d = pl.pallas_call(
        kernel,
        out_shape=jax.ShapeDtypeStruct((rows, 1), x.dtype),
        grid_spec=pltpu.PrefetchScalarGridSpec(
            num_scalar_prefetch=0,
            grid=grid,
            in_specs=[pl.BlockSpec((row_tile, col_tile), lambda i, k: (i, k))],
            out_specs=pl.BlockSpec((row_tile, 1), lambda i, k: (i, 0)),
        ),
        compiler_params=pltpu.CompilerParams(
            dimension_semantics=("parallel", "arbitrary"),
            vmem_limit_bytes=_VMEM_LIMIT_BYTES,
        ),
        cost_estimate=pl.CostEstimate(
            flops=rows * cols,
            transcendentals=0,
            bytes_accessed=rows * cols * itemsize + rows * itemsize,
        ),
    )(x2d)

    return out2d.reshape(N, C, 1, 1)


def _reference(x):
    return jnp.max(x, axis=(2, 3), keepdims=True)


if __name__ == "__main__":
    key = jax.random.PRNGKey(0)
    cases = [
        ((2, 4, 16, 16), jnp.float32),    # tiny -> small-input fast path
        ((3, 5, 33, 35), jnp.float32),    # odd shape, still small -> fast path
        ((8, 32, 64, 64), jnp.float32),   # pallas path, single column block, 2 row blocks
        ((3, 5, 200, 200), jnp.float32),  # pallas path: ragged rows AND masked multi-block reduction
        ((8, 32, 64, 64), jnp.bfloat16),  # pallas path, packed-sublane (16-row) dtype
    ]
    for i, (shape, dtype) in enumerate(cases):
        key, sub = jax.random.split(key)
        x = jax.random.normal(sub, shape, dtype=jnp.float32).astype(dtype)
        out = adaptive_max_pool2d_1(x)
        jax.block_until_ready(out)
        ref = _reference(x)
        assert out.shape == (shape[0], shape[1], 1, 1), f"bad shape on case {i}"
        assert jnp.array_equal(out, ref), f"mismatch vs reference on case {i}: {shape} {dtype}"

    print("KERNEL_OK")
</pallas_src>

<mosaic_0001>
module attributes {stable_mosaic.version = 11 : i64} {
  func.func @_global_max_kernel(%arg0: i32, %arg1: i32, %arg2: memref<128x4096xf32, #tpu.memory_space<vmem>>, %arg3: memref<128x1xf32, #tpu.memory_space<vmem>>) attributes {dimension_semantics = [#tpu.dimension_semantics<parallel>, #tpu.dimension_semantics<arbitrary>], iteration_bounds = array<i64: 2, 1>, scalar_prefetch = 0 : i64, scratch_operands = 0 : i64, tpu.core_type = #tpu.core_type<tc>, window_params = [{transform_indices = @transform_0, window_bounds = array<i64: 128, 4096>}, {transform_indices = @transform_1, window_bounds = array<i64: 128, 1>}]} {
    %c0_i32 = arith.constant 0 : i32
    %0 = arith.cmpi eq, %arg1, %c0_i32 : i32
    %1 = arith.extui %0 : i1 to i32
    %c0_i32_0 = arith.constant 0 : i32
    %2 = arith.cmpi ne, %1, %c0_i32_0 : i32
    scf.if %2 {
      %cst_6 = arith.constant 0xFF800000 : f32
      %9 = vector.broadcast %cst_6 : f32 to vector<128x1xf32>
      %c0_7 = arith.constant 0 : index
      %c0_8 = arith.constant 0 : index
      %10 = vector.load %arg3[%c0_7, %c0_8] : memref<128x1xf32, #tpu.memory_space<vmem>>, vector<128x1xf32>
      tpu.vector_store %arg3[%c0_7, %c0_8], %9 {strides = array<i32>} : memref<128x1xf32, #tpu.memory_space<vmem>>, vector<128x1xf32>,
    } else {
    }
    %c0 = arith.constant 0 : index
    %c0_1 = arith.constant 0 : index
    %3 = vector.load %arg2[%c0, %c0_1] : memref<128x4096xf32, #tpu.memory_space<vmem>>, vector<128x4096xf32>
    %c0_2 = arith.constant 0 : index
    %c0_3 = arith.constant 0 : index
    %4 = vector.load %arg3[%c0_2, %c0_3] : memref<128x1xf32, #tpu.memory_space<vmem>>, vector<128x1xf32>
    %cst = arith.constant dense<0xFF800000> : vector<128xf32>
    %5 = vector.multi_reduction <maximumf>, %3, %cst [1] : vector<128x4096xf32> to vector<128xf32>
    %6 = vector.shape_cast %5 : vector<128xf32> to vector<128x1xf32>
    %7 = arith.maximumf %4, %6 : vector<128x1xf32>
    %c0_4 = arith.constant 0 : index
    %c0_5 = arith.constant 0 : index
    %8 = vector.load %arg3[%c0_4, %c0_5] : memref<128x1xf32, #tpu.memory_space<vmem>>, vector<128x1xf32>
    tpu.vector_store %arg3[%c0_4, %c0_5], %7 {strides = array<i32>} : memref<128x1xf32, #tpu.memory_space<vmem>>, vector<128x1xf32>,
    return
  }
  func.func @transform_0(%arg0: i32, %arg1: i32) -> (i32, i32) {
    %c0_i32 = arith.constant 0 : i32
    return %arg0, %arg1 : i32, i32
  }
  func.func @transform_1(%arg0: i32, %arg1: i32) -> (i32, i32) {
    %c0_i32 = arith.constant 0 : i32
    %c0_i32_0 = arith.constant 0 : i32
    return %arg0, %c0_i32 : i32, i32
  }
}

</mosaic_0001>

<bundles_post_ra>
// kernel: tpu_custom_call.1
= control target key start
LH: loop header
LB: loop body
LE: loop exit
PB: predicated region body
PF: predicated region fallthrough
CT: control target
= control target key end

     0   :  { %6 = vsyncpa [#allocation3], 0  ;;  %s2235_s0 = inlined_call_operand.hbm [shape: f32[256,4096], index: 0, kind: input, shape index: {}]   ;;  %s2236_s1 = inlined_call_operand.vmem [shape: f32[256,1], index: 1, kind: output, shape index: {}]  }
   0x1   :  { %8 = vsyncpa [#allocation3 + $0x1], 0  ;;  %s1516_s6 = smov 0   ;;  %s1518_s7 = smov 0  }
   0x2   :  { %s1520_s8 = smov 0   ;;  %s1522_s9 = smov 0  }
   0x3   :  { %s1524_s10 = smov 0   ;;  %s1526_s11 = smov 0  }
   0x4 LB: > { %s1346_s12 = sadd.s32 4294967295, %s1500_s11   ;;  %s26_s13 = sadd.s32 1, %s1496_s10  ;;  %s1500_s11 = sphi %s1526_s11, %s14_s11   ;;  %s1496_s10 = sphi %s1524_s10, %s2244_s10   ;;  %s1492_s9 = sphi %s1522_s9, %s2243_s9   ;;  %s1488_s8 = sphi %s1520_s8, %s2242_s8   ;;  %s1484_s7 = sphi %s1518_s7, %s2241_s7   ;;  %s1480_s6 = sphi %s1516_s6, %s2240_s6  }
   0x5   : > { %p28_p0 = scmp.ge.s32.totalorder %s26_s13, 2  ;;  %s35_s14 = sadd.s32 1, %s1488_s8 }
   0x6   : > { %p42_p1 = scmp.ne.s32.totalorder %s1488_s8, %s1484_s7  ;;  %p43_p2 = scmp.eq.s32.totalorder %s1500_s11, 0 }
   0x7   : > { %s2246_s13 = smov (%p28_p0, %s26_s13), 0  ;;  %p48_p4 = scmp.ne.s32.totalorder %s1484_s7, %s1480_s6 }
   0x8   : > { %p1552_p3 = por %p43_p2, %p42_p1  ;;  %s30_s16 = ssub.s32 %s1496_s10, %s2246_s13 }
   0x9   : > { %p49_p5 = scmp.eq.s32.totalorder %s1346_s12, 0  ;;  %p33_p6 = scmp.eq.s32.totalorder %s30_s16, 0 }
   0xa   : > { %p1368_p8 = scmp.lt.s32.totalorder %s1500_s11, 2  ;;  %s98_s19 = sand.u32 1, %s1488_s8  }
   0xb   : > { %p1559_p7 = por %p49_p5, %p48_p4  ;;  %s1361_s20 = sshll.u32 %s1496_s10, 16 }
   0xc   : > { %s1565_s18 = scalar_select %p33_p6, %s1488_s8, %s35_s14  }
   0xd   : > { %s1350_s21 = sshll.u32 %s98_s19, 12  ;;  %s1572_s24 = scalar_lea.hbm %s2235_s0, %s1361_s20 }
   0xe   : > { %s102_s25 = scalar_lea.vmem [#allocation2], %s1350_s21  ;;  %p1576_p9 = pnand %p1368_p8, %p1552_p3 }
   0xf   : > { %s112_s26 = sshll.u32 %s102_s25, 4  ;;  %s1582_s28 = scalar_lea.sflag [#allocation3], %s98_s19  ;;  %s1580_s26 = int_to_ptr.vmem [resolvable:$true] %s112_s26 }
  0x10   : > { %s1420_s29 = scalar_lea.hbm %s1572_s24, 65536  ;;  %p1422_p11 = pneg %p1576_p9 }
  0x11   : > { %p1421_p10 = scmp.ne.s32.totalorder %s1572_s24, %s1420_s29  ;;  %s1425_s3 = scalar_lea.hbm %s2235_s0, 131072 }
  0x12   : > { %p1426_p0 = scmp.lt.u32.totalorder %s1572_s24, %s2235_s0  ;;  %p1427_p1 = scmp.lt.u32.totalorder %s1425_s3, %s1420_s29 }
  0x13   : > { %p1423_p12 = pnand %p1422_p11, %p1421_p10  ;;  %p1429_p3 = scmp.lt.u32.totalorder %s1420_s29, %s1572_s24 }
  0x14   : > { %p1428_p2 = por %p1427_p1, %p1426_p0 }
  0x15   : > { %p1424_p13 = pneg %p1423_p12 }
  0x16   : > { %p1430_p4 = por %p1429_p3, %p1428_p2 }
  0x18   : > { %p1431_p5 = pnand %p1430_p4, %p1424_p13 }
  0x1a   : > { %1434 = shalt.err (!%p1431_p5)
}
  0x1b   : > { %s1435_s6 = scalar_lea.vmem %s1580_s26, 65536  ;;  %s1502_s12 = smov [#allocation2]  }
  0x1c   : > { %p1436_p6 = scmp.ne.s32.totalorder %s1580_s26, %s1435_s6  ;;  %s1440_s14 = sshll.u32 %s1502_s12, 4  ;;  %s1441_s14 = int_to_ptr.vmem [resolvable:$false] %s1440_s14 }
  0x1d   : > { %s1442_s15 = scalar_lea.vmem %s1441_s14, 131072  ;;  %p1443_p12 = scmp.lt.s32.totalorder %s1580_s26, %s1441_s14 }
  0x1e   : > { %p1438_p8 = pnand %p1436_p6, %p1422_p11  ;;  %p1444_p0 = scmp.lt.s32.totalorder %s1442_s15, %s1435_s6 }
  0x20   : > { %p1439_p10 = pneg %p1438_p8  ;;  %p1445_p1 = por %p1444_p0, %p1443_p12 }
  0x22   : > { %p1446_p2 = pnand %p1445_p1, %p1439_p10 }
  0x24   : > { %1449 = shalt.err (!%p1446_p2)
}
  0x25   : > { %s1503_s16 = smov 4096   ;;  %s1504_s19 = smov 256  }
  0x26   : > { %1367 = dma.hbm_to_vmem [thread:$0]  (!%p1576_p9), %s1572_s24, 65536, %s1580_s26, %s1582_s28, %s1503_s16, %s1503_s16, %s1504_s19  }
  0x27   : > { %p1354_p11 = scmp.ge.s32.totalorder %s1500_s11, 1  ;;  %p120_p13 = scmp.lt.s32.totalorder %s1500_s11, 3 }
  0x29   : > { %p121_p3 = pnand %p1354_p11, %p120_p13 }
  0x2a   : > { %s126_s20 = sand.u32 (!%p121_p3), 1, %s1484_s7  }
  0x2b   : > { %124 = sbr.rel (%p121_p3) target bundleno = 406 (0x196), region = 24  ;;  %s1355_s21 = sshll.u32 (!%p121_p3), %s126_s20, 12 }
  0x2c   : > { %s127_s22 = scalar_lea.sflag (!%p121_p3), [#allocation3], %s126_s20  ;;  %s1613_s23 = scalar_lea.vmem (!%p121_p3), [#allocation2], %s1355_s21 }
  0x32   : > { %1475 = dma.done.wait (%p1559_p7), %s127_s22, 65536  }
  0x33   : > { %1477 = vsyncadd (%p1559_p7), %s127_s22, 4294901760  ;;  %v242_v0 = vld [vmem:[%s1613_s23 + $0x200] sm:$0xff]  ;;  %v243_v1 = vld [vmem:[%s1613_s23 + $0x208] sm:$0xff]  ;;  %s1356_s17 = sshll.u32 %s1492_s9, 4  ;;  %vm161_vm0 = vcmask 7168  }
  0x34   : > { %v244_v2 = vld [vmem:[%s1613_s23 + $0x210] sm:$0xff]  ;;  %v772_v3 = vmax.f32 %v242_v0, %v243_v1  ;;  %v245_v4 = vld [vmem:[%s1613_s23 + $0x218] sm:$0xff]  ;;  %v246_v6 = vld [vmem:[%s1613_s23 + $0x220] sm:$0xff]  ;;  %p152_p7 = scmp.lt.s32.totalorder %s1356_s17, 31 }
  0x35   : > { %v247_v8 = vld [vmem:[%s1613_s23 + $0x228] sm:$0xff]  ;;  %v248_v10 = vld [vmem:[%s1613_s23 + $0x230] sm:$0xff]  ;;  %v249_v12 = vld [vmem:[%s1613_s23 + $0x238] sm:$0xff] }
  0x36   : > { %v773_v5 = vmax.f32 %v772_v3, %v244_v2  ;;  %v178_v13 = vld [vmem:[%s1613_s23] sm:$0xff]  ;;  %v179_v15 = vld [vmem:[%s1613_s23 + $0x8] sm:$0xff]  ;;  %v180_v16 = vld [vmem:[%s1613_s23 + $0x10] sm:$0xff]  ;;  %s2248_s17 = smov (!%p152_p7, %s1356_s17), 31 }
  0x37   : > { %v250_v17 = vld [vmem:[%s1613_s23 + $0x240] sm:$0xff]  ;;  %v706_v18 = vmax.f32 %v178_v13, %v179_v15  ;;  %v181_v20 = vld [vmem:[%s1613_s23 + $0x18] sm:$0xff]  ;;  %v251_v21 = vld [vmem:[%s1613_s23 + $0x248] sm:$0xff]  ;;  %s1357_s9 = sshll.u32 %s2248_s17, 3 }
  0x38   : > { %v774_v7 = vmax.f32 %v773_v5, %v245_v4  ;;  %v182_v24 = vld [vmem:[%s1613_s23 + $0x20] sm:$0xff]  ;;  %v252_v25 = vld [vmem:[%s1613_s23 + $0x250] sm:$0xff]  ;;  %v183_v28 = vld [vmem:[%s1613_s23 + $0x28] sm:$0xff]  ;;  %s1863_s26 = scalar_lea.vmem %s2236_s1, %s1357_s9 }
  0x39   : > { %v707_v22 = vmax.f32 %v706_v18, %v180_v16  ;;  %v253_v29 = vld [vmem:[%s1613_s23 + $0x258] sm:$0xff]  ;;  %v184_v32 = vld [vmem:[%s1613_s23 + $0x30] sm:$0xff]  ;;  %v254_v33 = vld [vmem:[%s1613_s23 + $0x260] sm:$0xff] }
  0x3a   : > { %v775_v9 = vmax.f32 %v774_v7, %v246_v6  ;;  %v185_v36 = vld [vmem:[%s1613_s23 + $0x38] sm:$0xff]  ;;  %v274_v37 = vld [vmem:[%s1613_s23 + $0x300] sm:$0xff]  ;;  %v275_v38 = vld [vmem:[%s1613_s23 + $0x308] sm:$0xff] }
  0x3b   : > { %v708_v26 = vmax.f32 %v707_v22, %v181_v20  ;;  %v255_v39 = vld [vmem:[%s1613_s23 + $0x268] sm:$0xff]  ;;  %v276_v41 = vld [vmem:[%s1613_s23 + $0x310] sm:$0xff]  ;;  %v805_v42 = vmax.f32 %v274_v37, %v275_v38  ;;  %v186_v44 = vld [vmem:[%s1613_s23 + $0x40] sm:$0xff] }
  0x3c   : > { %v776_v11 = vmax.f32 %v775_v9, %v247_v8  ;;  %v277_v45 = vld [vmem:[%s1613_s23 + $0x318] sm:$0xff]  ;;  %v256_v46 = vld [vmem:[%s1613_s23 + $0x270] sm:$0xff]  ;;  %v187_v50 = vld [vmem:[%s1613_s23 + $0x48] sm:$0xff] }
  0x3d   : > { %v709_v30 = vmax.f32 %v708_v26, %v182_v24  ;;  %v806_v48 = vmax.f32 %v805_v42, %v276_v41  ;;  %v278_v51 = vld [vmem:[%s1613_s23 + $0x320] sm:$0xff]  ;;  %v257_v52 = vld [vmem:[%s1613_s23 + $0x278] sm:$0xff]  ;;  %v188_v56 = vld [vmem:[%s1613_s23 + $0x50] sm:$0xff] }
  0x3e   : > { %v777_v14 = vmax.f32 %v776_v11, %v248_v10  ;;  %v279_v57 = vld [vmem:[%s1613_s23 + $0x328] sm:$0xff]  ;;  %v258_v58 = vld [vmem:[%s1613_s23 + $0x280] sm:$0xff]  ;;  %v189_v62 = vld [vmem:[%s1613_s23 + $0x58] sm:$0xff] }
  0x3f   : > { %v710_v34 = vmax.f32 %v709_v30, %v183_v28  ;;  %v807_v54 = vmax.f32 %v806_v48, %v277_v45  ;;  %v280_v63 = vld [vmem:[%s1613_s23 + $0x330] sm:$0xff]  ;;  %v259_v0 = vld [vmem:[%s1613_s23 + $0x288] sm:$0xff]  ;;  %v190_v5 = vld [vmem:[%s1613_s23 + $0x60] sm:$0xff] }
  0x40   : > { %v778_v19 = vmax.f32 %v777_v14, %v249_v12  ;;  %v260_v3 = vld [vmem:[%s1613_s23 + $0x290] sm:$0xff]  ;;  %v281_v6 = vld [vmem:[%s1613_s23 + $0x338] sm:$0xff]  ;;  %v210_v9 = vld [vmem:[%s1613_s23 + $0x100] sm:$0xff] }
  0x41   : > { %v711_v40 = vmax.f32 %v710_v34, %v184_v32  ;;  %v808_v60 = vmax.f32 %v807_v54, %v278_v51  ;;  %v211_v10 = vld [vmem:[%s1613_s23 + $0x108] sm:$0xff]  ;;  %v212_v11 = vld [vmem:[%s1613_s23 + $0x110] sm:$0xff]  ;;  %v282_v14 = vld [vmem:[%s1613_s23 + $0x340] sm:$0xff] }
  0x42   : > { %v779_v23 = vmax.f32 %v778_v19, %v250_v17  ;;  %v191_v13 = vld [vmem:[%s1613_s23 + $0x68] sm:$0xff]  ;;  %v739_v15 = vmax.f32 %v210_v9, %v211_v10  ;;  %v261_v16 = vld [vmem:[%s1613_s23 + $0x298] sm:$0xff]  ;;  %v262_v24 = vld [vmem:[%s1613_s23 + $0x2a0] sm:$0xff] }
  0x43   : > { %v712_v47 = vmax.f32 %v711_v40, %v185_v36  ;;  %v809_v2 = vmax.f32 %v808_v60, %v279_v57  ;;  %v213_v19 = vld [vmem:[%s1613_s23 + $0x118] sm:$0xff]  ;;  %v283_v22 = vld [vmem:[%s1613_s23 + $0x348] sm:$0xff]  ;;  %v284_v30 = vld [vmem:[%s1613_s23 + $0x350] sm:$0xff] }
  0x44   : > { %v780_v27 = vmax.f32 %v779_v23, %v251_v21  ;;  %v192_v21 = vld [vmem:[%s1613_s23 + $0x70] sm:$0xff]  ;;  %v740_v23 = vmax.f32 %v739_v15, %v212_v11  ;;  %v263_v32 = vld [vmem:[%s1613_s23 + $0x2a8] sm:$0xff]  ;;  %v194_v37 = vld [vmem:[%s1613_s23 + $0x80] sm:$0xff] }
  0x45   : > { %v713_v53 = vmax.f32 %v712_v47, %v186_v44  ;;  %v810_v8 = vmax.f32 %v809_v2, %v280_v63  ;;  %v285_v38 = vld [vmem:[%s1613_s23 + $0x358] sm:$0xff]  ;;  %v264_v40 = vld [vmem:[%s1613_s23 + $0x2b0] sm:$0xff]  ;;  %v286_v47 = vld [vmem:[%s1613_s23 + $0x360] sm:$0xff] }
  0x46   : > { %v781_v31 = vmax.f32 %v780_v27, %v252_v25  ;;  %v214_v27 = vld [vmem:[%s1613_s23 + $0x120] sm:$0xff]  ;;  %v265_v44 = vld [vmem:[%s1613_s23 + $0x2b8] sm:$0xff]  ;;  %v339_v57 = vld [vmem:[%s1613_s23 + $0x508] sm:$0xff] }
  0x47   : > { %v714_v59 = vmax.f32 %v713_v53, %v187_v50  ;;  %v811_v18 = vmax.f32 %v810_v8, %v281_v6  ;;  %v338_v53 = vld [vmem:[%s1613_s23 + $0x500] sm:$0xff]  ;;  %v288_v2 = vld [vmem:[%s1613_s23 + $0x370] sm:$0xff]  ;;  %v219_v8 = vld [vmem:[%s1613_s23 + $0x148] sm:$0xff] }
  0x48   : > { %v782_v35 = vmax.f32 %v781_v31, %v253_v29  ;;  %v193_v29 = vld [vmem:[%s1613_s23 + $0x78] sm:$0xff]  ;;  %v741_v31 = vmax.f32 %v740_v23, %v213_v19  ;;  %v871_v63 = vmax.f32 %v338_v53, %v339_v57  ;;  %v198_v11 = vld [vmem:[%s1613_s23 + $0xa0] sm:$0xff]  ;;  %v268_v15 = vld [vmem:[%s1613_s23 + $0x2d0] sm:$0xff] }
  0x49   : > { %v715_v1 = vmax.f32 %v714_v59, %v188_v56  ;;  %v812_v26 = vmax.f32 %v811_v18, %v282_v14  ;;  %v266_v59 = vld [vmem:[%s1613_s23 + $0x2c0] sm:$0xff]  ;;  %v220_v18 = vld [vmem:[%s1613_s23 + $0x150] sm:$0xff] }
  0x4a   : > { %v783_v43 = vmax.f32 %v782_v35, %v254_v33  ;;  %v215_v35 = vld [vmem:[%s1613_s23 + $0x128] sm:$0xff]  ;;  %v342_v14 = vld [vmem:[%s1613_s23 + $0x520] sm:$0xff]  ;;  %v308_v53 = vld [vmem:[%s1613_s23 + $0x410] sm:$0xff] }
  0x4b   : > { %v716_v7 = vmax.f32 %v715_v1, %v189_v62  ;;  %v813_v34 = vmax.f32 %v812_v26, %v283_v22  ;;  %v218_v62 = vld [vmem:[%s1613_s23 + $0x140] sm:$0xff]  ;;  %v197_v1 = vld [vmem:[%s1613_s23 + $0x98] sm:$0xff] }
  0x4c   : > { %v784_v49 = vmax.f32 %v783_v43, %v255_v39  ;;  %v742_v39 = vmax.f32 %v741_v31, %v214_v27  ;;  %v216_v43 = vld [vmem:[%s1613_s23 + $0x130] sm:$0xff]  ;;  %v290_v22 = vld [vmem:[%s1613_s23 + $0x380] sm:$0xff] }
  0x4d   : > { %v717_v17 = vmax.f32 %v716_v7, %v190_v5  ;;  %v814_v42 = vmax.f32 %v813_v34, %v284_v30  ;;  %v267_v5 = vld [vmem:[%s1613_s23 + $0x2c8] sm:$0xff]  ;;  %v270_v26 = vld [vmem:[%s1613_s23 + $0x2e0] sm:$0xff] }
  0x4e   : > { %v785_v55 = vmax.f32 %v784_v49, %v256_v46  ;;  %v195_v46 = vld [vmem:[%s1613_s23 + $0x88] sm:$0xff]  ;;  %v743_v48 = vmax.f32 %v742_v39, %v215_v35  ;;  %v196_v49 = vld [vmem:[%s1613_s23 + $0x90] sm:$0xff] }
  0x4f   : > { %v718_v25 = vmax.f32 %v717_v17, %v191_v13  ;;  %v815_v51 = vmax.f32 %v814_v42, %v285_v38  ;;  %v344_v35 = vld [vmem:[%s1613_s23 + $0x530] sm:$0xff] }
  0x50   : > { %v786_v61 = vmax.f32 %v785_v55, %v257_v52  ;;  %v217_v52 = vld [vmem:[%s1613_s23 + $0x138] sm:$0xff]  ;;  %v287_v55 = vld [vmem:[%s1613_s23 + $0x368] sm:$0xff]  ;;  %v744_v56 = vmax.f32 %v743_v48, %v216_v43  ;;  %v292_v39 = vld [vmem:[%s1613_s23 + $0x390] sm:$0xff] }
  0x51   : > { %v719_v33 = vmax.f32 %v718_v25, %v192_v21  ;;  %v199_v21 = vld [vmem:[%s1613_s23 + $0xa8] sm:$0xff]  ;;  %v269_v25 = vld [vmem:[%s1613_s23 + $0x2d8] sm:$0xff]  ;;  %v202_v48 = vld [vmem:[%s1613_s23 + $0xc0] sm:$0xff] }
  0x52   : > { %v787_v4 = vmax.f32 %v786_v61, %v258_v58  ;;  %v340_v58 = vld [vmem:[%s1613_s23 + $0x510] sm:$0xff]  ;;  %v816_v61 = vmax.f32 %v815_v51, %v286_v47  ;;  %v307_v47 = vld [vmem:[%s1613_s23 + $0x408] sm:$0xff] }
  0x53   : > { %v720_v41 = vmax.f32 %v719_v33, %v193_v29  ;;  %v872_v9 = vmax.f32 %v871_v63, %v340_v58  ;;  %v221_v29 = vld [vmem:[%s1613_s23 + $0x158] sm:$0xff]  ;;  %v291_v33 = vld [vmem:[%s1613_s23 + $0x388] sm:$0xff]  ;;  %v346_v58 = vld [vmem:[%s1613_s23 + $0x540] sm:$0xff] }
  0x54   : > { %v788_v12 = vmax.f32 %v787_v4, %v259_v0  ;;  %v341_v4 = vld [vmem:[%s1613_s23 + $0x518] sm:$0xff]  ;;  %v817_v7 = vmax.f32 %v816_v61, %v287_v55  ;;  %v223_v51 = vld [vmem:[%s1613_s23 + $0x168] sm:$0xff] }
  0x55   : > { %v721_v50 = vmax.f32 %v720_v41, %v194_v37  ;;  %v873_v19 = vmax.f32 %v872_v9, %v341_v4  ;;  %v201_v37 = vld [vmem:[%s1613_s23 + $0xb8] sm:$0xff]  ;;  %v222_v41 = vld [vmem:[%s1613_s23 + $0x160] sm:$0xff]  ;;  %v203_v61 = vld [vmem:[%s1613_s23 + $0xc8] sm:$0xff] }
  0x56   : > { %v789_v20 = vmax.f32 %v788_v12, %v260_v3  ;;  %v745_v3 = vmax.f32 %v744_v56, %v217_v52  ;;  %v289_v12 = vld [vmem:[%s1613_s23 + $0x378] sm:$0xff]  ;;  %v818_v17 = vmax.f32 %v817_v7, %v288_v2  ;;  %v294_v4 = vld [vmem:[%s1613_s23 + $0x3a0] sm:$0xff]  ;;  %v204_v9 = vld [vmem:[%s1613_s23 + $0xd0] sm:$0xff] }
  0x57   : > { %v722_v60 = vmax.f32 %v721_v50, %v195_v46  ;;  %v874_v30 = vmax.f32 %v873_v19, %v342_v14  ;;  %v306_v46 = vld [vmem:[%s1613_s23 + $0x400] sm:$0xff]  ;;  %v293_v56 = vld [vmem:[%s1613_s23 + $0x398] sm:$0xff]  ;;  %v311_v19 = vld [vmem:[%s1613_s23 + $0x428] sm:$0xff] }
  0x58   : > { %v790_v28 = vmax.f32 %v789_v20, %v261_v16  ;;  %v746_v13 = vmax.f32 %v745_v3, %v218_v62  ;;  %v310_v7 = vld [vmem:[%s1613_s23 + $0x420] sm:$0xff] }
  0x59   : > { %v723_v6 = vmax.f32 %v722_v60, %v196_v49  ;;  %v272_v60 = vld [vmem:[%s1613_s23 + $0x2f0] sm:$0xff] }
  0x5a   : > { %v791_v36 = vmax.f32 %v790_v28, %v262_v24  ;;  %v747_v23 = vmax.f32 %v746_v13, %v219_v8  ;;  %v343_v24 = vld [vmem:[%s1613_s23 + $0x528] sm:$0xff]  ;;  %v819_v28 = vmax.f32 %v818_v17, %v289_v12  ;;  %v273_v8 = vld [vmem:[%s1613_s23 + $0x2f8] sm:$0xff] }
  0x5b   : > { %v724_v16 = vmax.f32 %v723_v6, %v197_v1  ;;  %v875_v42 = vmax.f32 %v874_v30, %v343_v24  ;;  %v347_v6 = vld [vmem:[%s1613_s23 + $0x548] sm:$0xff]  ;;  %v225_v12 = vld [vmem:[%s1613_s23 + $0x178] sm:$0xff]  ;;  %v312_v30 = vld [vmem:[%s1613_s23 + $0x430] sm:$0xff] }
  0x5c   : > { %v792_v45 = vmax.f32 %v791_v36, %v263_v32  ;;  %v200_v32 = vld [vmem:[%s1613_s23 + $0xb0] sm:$0xff]  ;;  %v748_v34 = vmax.f32 %v747_v23, %v220_v18  ;;  %v271_v36 = vld [vmem:[%s1613_s23 + $0x2e8] sm:$0xff]  ;;  %v226_v23 = vld [vmem:[%s1613_s23 + $0x180] sm:$0xff] }
  0x5d   : > { %v725_v27 = vmax.f32 %v724_v16, %v198_v11  ;;  %v876_v52 = vmax.f32 %v875_v42, %v344_v35  ;;  %v295_v16 = vld [vmem:[%s1613_s23 + $0x3a8] sm:$0xff]  ;;  %v348_v18 = vld [vmem:[%s1613_s23 + $0x550] sm:$0xff]  ;;  %v313_v42 = vld [vmem:[%s1613_s23 + $0x438] sm:$0xff] }
  0x5e   : > { %v793_v54 = vmax.f32 %v792_v45, %v264_v40  ;;  %v820_v40 = vmax.f32 %v819_v28, %v290_v22  ;;  %v345_v45 = vld [vmem:[%s1613_s23 + $0x538] sm:$0xff]  ;;  %v227_v35 = vld [vmem:[%s1613_s23 + $0x188] sm:$0xff] }
  0x5f   : > { %v726_v38 = vmax.f32 %v725_v27, %v199_v21  ;;  %v877_v1 = vmax.f32 %v876_v52, %v345_v45  ;;  %v296_v27 = vld [vmem:[%s1613_s23 + $0x3b0] sm:$0xff]  ;;  %v351_v52 = vld [vmem:[%s1613_s23 + $0x568] sm:$0xff] }
  0x60   : > { %v794_v0 = vmax.f32 %v793_v54, %v265_v44  ;;  %v749_v44 = vmax.f32 %v748_v34, %v221_v29  ;;  %v821_v50 = vmax.f32 %v820_v40, %v291_v33  ;;  %v838_v54 = vmax.f32 %v306_v46, %v307_v47  ;;  %v349_v29 = vld [vmem:[%s1613_s23 + $0x558] sm:$0xff]  ;;  %v402_v47 = vld [vmem:[%s1613_s23 + $0x700] sm:$0xff] }
  0x61   : > { %v727_v49 = vmax.f32 %v726_v38, %v200_v32  ;;  %v878_v13 = vmax.f32 %v877_v1, %v346_v58  ;;  %v297_v33 = vld [vmem:[%s1613_s23 + $0x3b8] sm:$0xff]  ;;  %v207_v38 = vld [vmem:[%s1613_s23 + $0xe8] sm:$0xff] }
  0x62   : > { %v795_v10 = vmax.f32 %v794_v0, %v266_v59  ;;  %v750_v57 = vmax.f32 %v749_v44, %v222_v41  ;;  %v309_v59 = vld [vmem:[%s1613_s23 + $0x418] sm:$0xff]  ;;  %v822_v63 = vmax.f32 %v821_v50, %v292_v39  ;;  %v224_v0 = vld [vmem:[%s1613_s23 + $0x170] sm:$0xff]  ;;  %v839_v2 = vmax.f32 %v838_v54, %v308_v53  ;;  %v350_v41 = vld [vmem:[%s1613_s23 + $0x560] sm:$0xff] }
  0x63   : > { %v728_v62 = vmax.f32 %v727_v49, %v201_v37  ;;  %v879_v24 = vmax.f32 %v878_v13, %v347_v6  ;;  %v228_v39 = vld [vmem:[%s1613_s23 + $0x190] sm:$0xff]  ;;  %v298_v50 = vld [vmem:[%s1613_s23 + $0x3c0] sm:$0xff]  ;;  %v229_v58 = vld [vmem:[%s1613_s23 + $0x198] sm:$0xff] }
  0x64   : > { %v796_v20 = vmax.f32 %v795_v10, %v267_v5  ;;  %v751_v5 = vmax.f32 %v750_v57, %v223_v51  ;;  %v823_v11 = vmax.f32 %v822_v63, %v293_v56  ;;  %v840_v14 = vmax.f32 %v839_v2, %v309_v59  ;;  %v404_v49 = vld [vmem:[%s1613_s23 + $0x710] sm:$0xff]  ;;  %v314_v53 = vld [vmem:[%s1613_s23 + $0x440] sm:$0xff]  ;;  %v315_v1 = vld [vmem:[%s1613_s23 + $0x448] sm:$0xff] }
  0x65   : > { %v729_v10 = vmax.f32 %v728_v62, %v202_v48  ;;  %v403_v48 = vld [vmem:[%s1613_s23 + $0x708] sm:$0xff]  ;;  %v230_v6 = vld [vmem:[%s1613_s23 + $0x1a0] sm:$0xff]  ;;  %v316_v13 = vld [vmem:[%s1613_s23 + $0x450] sm:$0xff] }
  0x66   : > { %v797_v31 = vmax.f32 %v796_v20, %v268_v15  ;;  %v752_v17 = vmax.f32 %v751_v5, %v224_v0  ;;  %v205_v20 = vld [vmem:[%s1613_s23 + $0xd8] sm:$0xff]  ;;  %v824_v22 = vmax.f32 %v823_v11, %v294_v4  ;;  %v937_v54 = vmax.f32 %v402_v47, %v403_v48  ;;  %v299_v62 = vld [vmem:[%s1613_s23 + $0x3c8] sm:$0xff]  ;;  %v352_v0 = vld [vmem:[%s1613_s23 + $0x570] sm:$0xff] }
  0x67   : > { %v730_v21 = vmax.f32 %v729_v10, %v203_v61  ;;  %v405_v61 = vld [vmem:[%s1613_s23 + $0x718] sm:$0xff]  ;;  %v300_v10 = vld [vmem:[%s1613_s23 + $0x3d0] sm:$0xff]  ;;  %v371_v48 = vld [vmem:[%s1613_s23 + $0x608] sm:$0xff] }
  0x68   : > { %v798_v43 = vmax.f32 %v797_v31, %v269_v25  ;;  %v841_v25 = vmax.f32 %v840_v14, %v310_v7  ;;  %v753_v28 = vmax.f32 %v752_v17, %v225_v12  ;;  %v206_v31 = vld [vmem:[%s1613_s23 + $0xe0] sm:$0xff]  ;;  %v825_v34 = vmax.f32 %v824_v22, %v295_v16  ;;  %v353_v12 = vld [vmem:[%s1613_s23 + $0x578] sm:$0xff]  ;;  %v231_v17 = vld [vmem:[%s1613_s23 + $0x1a8] sm:$0xff] }
  0x69   : > { %v731_v32 = vmax.f32 %v730_v21, %v204_v9  ;;  %v938_v2 = vmax.f32 %v937_v54, %v404_v49  ;;  %v406_v9 = vld [vmem:[%s1613_s23 + $0x720] sm:$0xff]  ;;  %v301_v21 = vld [vmem:[%s1613_s23 + $0x3d8] sm:$0xff]  ;;  %v372_v49 = vld [vmem:[%s1613_s23 + $0x610] sm:$0xff] }
  0x6a   : > { %v799_v55 = vmax.f32 %v798_v43, %v270_v26  ;;  %v842_v37 = vmax.f32 %v841_v25, %v311_v19  ;;  %v754_v40 = vmax.f32 %v753_v28, %v226_v23  ;;  %v826_v44 = vmax.f32 %v825_v34, %v296_v27  ;;  %v354_v23 = vld [vmem:[%s1613_s23 + $0x580] sm:$0xff]  ;;  %v233_v34 = vld [vmem:[%s1613_s23 + $0x1b8] sm:$0xff] }
  0x6b   : > { %v732_v43 = vmax.f32 %v731_v32, %v205_v20  ;;  %v939_v14 = vmax.f32 %v938_v2, %v405_v61  ;;  %v407_v20 = vld [vmem:[%s1613_s23 + $0x728] sm:$0xff]  ;;  %v302_v27 = vld [vmem:[%s1613_s23 + $0x3e0] sm:$0xff]  ;;  %v408_v32 = vld [vmem:[%s1613_s23 + $0x730] sm:$0xff] }
  0x6c   : > { %v800_v3 = vmax.f32 %v799_v55, %v271_v36  ;;  %v880_v36 = vmax.f32 %v879_v24, %v348_v18  ;;  %v843_v46 = vmax.f32 %v842_v37, %v312_v30  ;;  %v755_v51 = vmax.f32 %v754_v40, %v227_v35  ;;  %v208_v55 = vld [vmem:[%s1613_s23 + $0xf0] sm:$0xff]  ;;  %v317_v24 = vld [vmem:[%s1613_s23 + $0x458] sm:$0xff]  ;;  %v318_v37 = vld [vmem:[%s1613_s23 + $0x460] sm:$0xff] }
  0x6d   : > { %v733_v56 = vmax.f32 %v732_v43, %v206_v31  ;;  %v827_v57 = vmax.f32 %v826_v44, %v297_v33  ;;  %v940_v25 = vmax.f32 %v939_v14, %v406_v9  ;;  %v303_v33 = vld [vmem:[%s1613_s23 + $0x3e8] sm:$0xff]  ;;  %v356_v40 = vld [vmem:[%s1613_s23 + $0x590] sm:$0xff]  ;;  %v409_v43 = vld [vmem:[%s1613_s23 + $0x738] sm:$0xff] }
  0x6e   : > { %v801_v15 = vmax.f32 %v800_v3, %v272_v60  ;;  %v881_v45 = vmax.f32 %v880_v36, %v349_v29  ;;  %v844_v60 = vmax.f32 %v843_v46, %v313_v42  ;;  %v756_v63 = vmax.f32 %v755_v51, %v228_v39  ;;  %v209_v3 = vld [vmem:[%s1613_s23 + $0xf8] sm:$0xff]  ;;  %v232_v29 = vld [vmem:[%s1613_s23 + $0x1b0] sm:$0xff]  ;;  %v355_v36 = vld [vmem:[%s1613_s23 + $0x588] sm:$0xff] }
  0x6f   : > { %v734_v4 = vmax.f32 %v733_v56, %v207_v38  ;;  %v828_v5 = vmax.f32 %v827_v57, %v298_v50  ;;  %v941_v38 = vmax.f32 %v940_v25, %v407_v20  ;;  %v370_v44 = vld [vmem:[%s1613_s23 + $0x600] sm:$0xff]  ;;  %v319_v46 = vld [vmem:[%s1613_s23 + $0x468] sm:$0xff]  ;;  %v304_v50 = vld [vmem:[%s1613_s23 + $0x3f0] sm:$0xff] }
  0x70   : > { %v802_v26 = vmax.f32 %v801_v15, %v273_v8  ;;  %v882_v59 = vmax.f32 %v881_v45, %v350_v41  ;;  %v845_v8 = vmax.f32 %v844_v60, %v314_v53  ;;  %v757_v11 = vmax.f32 %v756_v63, %v229_v58  ;;  %v357_v58 = vld [vmem:[%s1613_s23 + $0x598] sm:$0xff]  ;;  %v374_v9 = vld [vmem:[%s1613_s23 + $0x620] sm:$0xff]  ;;  %v412_v14 = vld [vmem:[%s1613_s23 + $0x750] sm:$0xff] }
  0x71   : > { %v735_v15 = vmax.f32 %v734_v4, %v208_v55  ;;  %v829_v16 = vmax.f32 %v828_v5, %v299_v62  ;;  %v942_v47 = vmax.f32 %v941_v38, %v408_v32  ;;  %v410_v55 = vld [vmem:[%s1613_s23 + $0x740] sm:$0xff]  ;;  %v904_v56 = vmax.f32 %v370_v44, %v371_v48  ;;  %v373_v61 = vld [vmem:[%s1613_s23 + $0x618] sm:$0xff]  ;;  %v375_v20 = vld [vmem:[%s1613_s23 + $0x628] sm:$0xff] }
  0x72   : > { %803 = vmax.xlane.f32.xlu1 %v802_v26  ;;  %v883_v7 = vmax.f32 %v882_v59, %v351_v52  ;;  %v846_v19 = vmax.f32 %v845_v8, %v315_v1  ;;  %v758_v22 = vmax.f32 %v757_v11, %v230_v6  ;;  %v234_v52 = vld [vmem:[%s1613_s23 + $0x1c0] sm:$0xff]  ;;  %v320_v59 = vld [vmem:[%s1613_s23 + $0x470] sm:$0xff]  ;;  %v305_v62 = vld [vmem:[%s1613_s23 + $0x3f8] sm:$0xff] }
  0x73   : > { %v736_v26 = vmax.f32 %v735_v15, %v209_v3  ;;  %v830_v28 = vmax.f32 %v829_v16, %v300_v10  ;;  %v943_v60 = vmax.f32 %v942_v47, %v409_v43  ;;  %v411_v3 = vld [vmem:[%s1613_s23 + $0x748] sm:$0xff]  ;;  %v905_v4 = vmax.f32 %v904_v56, %v372_v49  ;;  %v358_v6 = vld [vmem:[%s1613_s23 + $0x5a0] sm:$0xff]  ;;  %v236_v11 = vld [vmem:[%s1613_s23 + $0x1d0] sm:$0xff] }
  0x74   : > { %v884_v18 = vmax.f32 %v883_v7, %v352_v0  ;;  %v847_v31 = vmax.f32 %v846_v19, %v316_v13  ;;  %v759_v35 = vmax.f32 %v758_v22, %v231_v17  ;;  %v235_v0 = vld [vmem:[%s1613_s23 + $0x1c8] sm:$0xff]  ;;  %v321_v7 = vld [vmem:[%s1613_s23 + $0x478] sm:$0xff]  ;;  %v376_v32 = vld [vmem:[%s1613_s23 + $0x630] sm:$0xff] }
  0x75   : > { %737 = vmax.xlane.f32.xlu0 %v736_v26  ;;  %v831_v39 = vmax.f32 %v830_v28, %v301_v21  ;;  %v944_v8 = vmax.f32 %v943_v60, %v410_v55  ;;  %v906_v15 = vmax.f32 %v905_v4, %v373_v61  ;;  %v359_v17 = vld [vmem:[%s1613_s23 + $0x5a8] sm:$0xff]  ;;  %v237_v22 = vld [vmem:[%s1613_s23 + $0x1d8] sm:$0xff]  ;;  %v414_v38 = vld [vmem:[%s1613_s23 + $0x760] sm:$0xff] }
  0x76   : > { %v885_v30 = vmax.f32 %v884_v18, %v353_v12  ;;  %v848_v42 = vmax.f32 %v847_v31, %v317_v24  ;;  %v760_v45 = vmax.f32 %v759_v35, %v232_v29  ;;  %v322_v18 = vld [vmem:[%s1613_s23 + $0x480] sm:$0xff]  ;;  %v413_v26 = vld [vmem:[%s1613_s23 + $0x758] sm:$0xff]  ;;  %v360_v29 = vld [vmem:[%s1613_s23 + $0x5b0] sm:$0xff] }
  0x77   : > { %v832_v51 = vmax.f32 %v831_v39, %v302_v27  ;;  %v945_v19 = vmax.f32 %v944_v8, %v411_v3  ;;  %v907_v27 = vmax.f32 %v906_v15, %v374_v9  ;;  %v466_v43 = vld [vmem:[%s1613_s23 + $0x900] sm:$0xff]  ;;  %v467_v44 = vld [vmem:[%s1613_s23 + $0x908] sm:$0xff]  ;;  %v469_v56 = vld [vmem:[%s1613_s23 + $0x918] sm:$0xff] }
  0x78   : > { %v886_v41 = vmax.f32 %v885_v30, %v354_v23  ;;  %v849_v54 = vmax.f32 %v848_v42, %v318_v37  ;;  %v761_v57 = vmax.f32 %v760_v45, %v233_v34  ;;  %v238_v23 = vld [vmem:[%s1613_s23 + $0x1e0] sm:$0xff]  ;;  %v323_v30 = vld [vmem:[%s1613_s23 + $0x488] sm:$0xff]  ;;  %v361_v34 = vld [vmem:[%s1613_s23 + $0x5b8] sm:$0xff] }
  0x79   : > { %v833_v63 = vmax.f32 %v832_v51, %v303_v33  ;;  %v946_v31 = vmax.f32 %v945_v19, %v412_v14  ;;  %v239_v33 = vld [vmem:[%s1613_s23 + $0x1e8] sm:$0xff]  ;;  %v908_v39 = vmax.f32 %v907_v27, %v375_v20  ;;  %v377_v42 = vld [vmem:[%s1613_s23 + $0x638] sm:$0xff]  ;;  %v362_v45 = vld [vmem:[%s1613_s23 + $0x5c0] sm:$0xff]  ;;  %v1003_v51 = vmax.f32 %v466_v43, %v467_v44 }
  0x7a   : > { %v887_v53 = vmax.f32 %v886_v41, %v355_v36  ;;  %v850_v2 = vmax.f32 %v849_v54, %v319_v46  ;;  %v762_v5 = vmax.f32 %v761_v57, %v234_v52  ;;  %v324_v36 = vld [vmem:[%s1613_s23 + $0x490] sm:$0xff]  ;;  %v415_v48 = vld [vmem:[%s1613_s23 + $0x768] sm:$0xff]  ;;  %v378_v55 = vld [vmem:[%s1613_s23 + $0x640] sm:$0xff] }
  0x7b   : > { %v834_v10 = vmax.f32 %v833_v63, %v304_v50  ;;  %v947_v41 = vmax.f32 %v946_v31, %v413_v26  ;;  %v909_v49 = vmax.f32 %v908_v39, %v376_v32  ;;  %v468_v50 = vld [vmem:[%s1613_s23 + $0x910] sm:$0xff]  ;;  %v379_v3 = vld [vmem:[%s1613_s23 + $0x648] sm:$0xff]  ;;  %v470_v4 = vld [vmem:[%s1613_s23 + $0x920] sm:$0xff] }
  0x7c   : > { %v888_v1 = vmax.f32 %v887_v53, %v356_v40  ;;  %v851_v13 = vmax.f32 %v850_v2, %v320_v59  ;;  %v763_v16 = vmax.f32 %v762_v5, %v235_v0  ;;  %v325_v53 = vld [vmem:[%s1613_s23 + $0x498] sm:$0xff]  ;;  %v240_v57 = vld [vmem:[%s1613_s23 + $0x1f0] sm:$0xff]  ;;  %v1004_v63 = vmax.f32 %v1003_v51, %v468_v50  ;;  %v418_v20 = vld [vmem:[%s1613_s23 + $0x780] sm:$0xff] }
  0x7d   : > { %v835_v21 = vmax.f32 %v834_v10, %v305_v62  ;;  %v948_v54 = vmax.f32 %v947_v41, %v414_v38  ;;  %v416_v61 = vld [vmem:[%s1613_s23 + $0x770] sm:$0xff]  ;;  %v910_v62 = vmax.f32 %v909_v49, %v377_v42  ;;  %v241_v5 = vld [vmem:[%s1613_s23 + $0x1f8] sm:$0xff]  ;;  %v419_v32 = vld [vmem:[%s1613_s23 + $0x788] sm:$0xff] }
  0x7e   : > { %v889_v12 = vmax.f32 %v888_v1, %v357_v58  ;;  %v852_v25 = vmax.f32 %v851_v13, %v321_v7  ;;  %v764_v28 = vmax.f32 %v763_v16, %v236_v11  ;;  %v363_v58 = vld [vmem:[%s1613_s23 + $0x5c8] sm:$0xff]  ;;  %v326_v1 = vld [vmem:[%s1613_s23 + $0x4a0] sm:$0xff]  ;;  %v417_v9 = vld [vmem:[%s1613_s23 + $0x778] sm:$0xff]  ;;  %v1005_v11 = vmax.f32 %v1004_v63, %v469_v56 }
  0x7f   : > { %836 = vmax.xlane.f32.xlu1 %v835_v21  ;;  %v949_v2 = vmax.f32 %v948_v54, %v415_v48  ;;  %v911_v10 = vmax.f32 %v910_v62, %v378_v55  ;;  %v327_v13 = vld [vmem:[%s1613_s23 + $0x4a8] sm:$0xff]  ;;  %v380_v15 = vld [vmem:[%s1613_s23 + $0x650] sm:$0xff]  ;;  %v381_v26 = vld [vmem:[%s1613_s23 + $0x658] sm:$0xff] }
  0x80   : > { %v890_v24 = vmax.f32 %v889_v12, %v358_v6  ;;  %v853_v37 = vmax.f32 %v852_v25, %v322_v18  ;;  %v765_v40 = vmax.f32 %v764_v28, %v237_v22  ;;  %v364_v6 = vld [vmem:[%s1613_s23 + $0x5d0] sm:$0xff]  ;;  %v471_v16 = vld [vmem:[%s1613_s23 + $0x928] sm:$0xff]  ;;  %v1006_v22 = vmax.f32 %v1005_v11, %v470_v4  ;;  %v366_v28 = vld [vmem:[%s1613_s23 + $0x5e0] sm:$0xff] }
  0x81   : > { %v950_v14 = vmax.f32 %v949_v2, %v416_v61  ;;  %v912_v21 = vmax.f32 %v911_v10, %v379_v3  ;;  %v472_v27 = vld [vmem:[%s1613_s23 + $0x930] sm:$0xff]  ;;  %v382_v38 = vld [vmem:[%s1613_s23 + $0x660] sm:$0xff]  ;;  %v473_v39 = vld [vmem:[%s1613_s23 + $0x938] sm:$0xff] }
  0x82   : > { %v891_v35 = vmax.f32 %v890_v24, %v359_v17  ;;  %v854_v47 = vmax.f32 %v853_v37, %v323_v30  ;;  %v766_v52 = vmax.f32 %v765_v40, %v238_v23  ;;  %v365_v17 = vld [vmem:[%s1613_s23 + $0x5d8] sm:$0xff]  ;;  %v328_v24 = vld [vmem:[%s1613_s23 + $0x4b0] sm:$0xff]  ;;  %v434_v44 = vld [vmem:[%s1613_s23 + $0x800] sm:$0xff] }
  0x83   : > { %v951_v25 = vmax.f32 %v950_v14, %v417_v9  ;;  %v329_v30 = vld [vmem:[%s1613_s23 + $0x4b8] sm:$0xff]  ;;  %v383_v49 = vld [vmem:[%s1613_s23 + $0x668] sm:$0xff]  ;;  %v474_v50 = vld [vmem:[%s1613_s23 + $0x940] sm:$0xff] }
  0x84   : > { %v892_v46 = vmax.f32 %v891_v35, %v360_v29  ;;  %v855_v60 = vmax.f32 %v854_v47, %v324_v36  ;;  %v767_v0 = vmax.f32 %v766_v52, %v239_v33  ;;  %v913_v33 = vmax.f32 %v912_v21, %v380_v15  ;;  %v367_v35 = vld [vmem:[%s1613_s23 + $0x5e8] sm:$0xff]  ;;  %v420_v36 = vld [vmem:[%s1613_s23 + $0x790] sm:$0xff]  ;;  %v330_v47 = vld [vmem:[%s1613_s23 + $0x4c0] sm:$0xff] }
  0x85   : > { %v952_v37 = vmax.f32 %v951_v25, %v418_v20  ;;  %v368_v52 = vld [vmem:[%s1613_s23 + $0x5f0] sm:$0xff]  ;;  %v421_v55 = vld [vmem:[%s1613_s23 + $0x798] sm:$0xff]  ;;  %v475_v62 = vld [vmem:[%s1613_s23 + $0x948] sm:$0xff] }
  0x86   : > { %v893_v59 = vmax.f32 %v892_v46, %v361_v34  ;;  %v856_v8 = vmax.f32 %v855_v60, %v325_v53  ;;  %v768_v12 = vmax.f32 %v767_v0, %v240_v57  ;;  %v1007_v34 = vmax.f32 %v1006_v22, %v471_v16  ;;  %v436_v46 = vld [vmem:[%s1613_s23 + $0x810] sm:$0xff]  ;;  %v369_v0 = vld [vmem:[%s1613_s23 + $0x5f8] sm:$0xff]  ;;  %v422_v3 = vld [vmem:[%s1613_s23 + $0x7a0] sm:$0xff] }
  0x87   : > { %v914_v42 = vmax.f32 %v913_v33, %v381_v26  ;;  %v953_v48 = vmax.f32 %v952_v37, %v419_v32  ;;  %v384_v61 = vld [vmem:[%s1613_s23 + $0x670] sm:$0xff]  ;;  %v385_v9 = vld [vmem:[%s1613_s23 + $0x678] sm:$0xff]  ;;  %v423_v14 = vld [vmem:[%s1613_s23 + $0x7a8] sm:$0xff] }
  0x88   : > { %v894_v7 = vmax.f32 %v893_v59, %v362_v45  ;;  %v857_v19 = vmax.f32 %v856_v8, %v326_v1  ;;  %v769_v23 = vmax.f32 %v768_v12, %v241_v5  ;;  %v1008_v43 = vmax.f32 %v1007_v34, %v472_v27  ;;  %v435_v45 = vld [vmem:[%s1613_s23 + $0x808] sm:$0xff]  ;;  %v476_v10 = vld [vmem:[%s1613_s23 + $0x950] sm:$0xff]  ;;  %v386_v21 = vld [vmem:[%s1613_s23 + $0x680] sm:$0xff] }
  0x89   : > { %v970_v51 = vmax.f32 %v434_v44, %v435_v45  ;;  %v915_v56 = vmax.f32 %v914_v42, %v382_v38  ;;  %v331_v59 = vld [vmem:[%s1613_s23 + $0x4c8] sm:$0xff]  ;;  %v954_v60 = vmax.f32 %v953_v48, %v420_v36  ;;  %v477_v22 = vld [vmem:[%s1613_s23 + $0x958] sm:$0xff]  ;;  %v334_v25 = vld [vmem:[%s1613_s23 + $0x4e0] sm:$0xff] }
  0x8a   : > { %v895_v18 = vmax.f32 %v894_v7, %v363_v58  ;;  %v858_v31 = vmax.f32 %v857_v19, %v327_v13  ;;  %770 = vmax.xlane.f32.xlu0 %v769_v23  ;;  %v1009_v57 = vmax.f32 %v1008_v43, %v473_v39  ;;  %v437_v58 = vld [vmem:[%s1613_s23 + $0x818] sm:$0xff]  ;;  %v332_v7 = vld [vmem:[%s1613_s23 + $0x4d0] sm:$0xff]  ;;  %v387_v34 = vld [vmem:[%s1613_s23 + $0x688] sm:$0xff] }
  0x8b   : > { %v971_v63 = vmax.f32 %v970_v51, %v436_v46  ;;  %v916_v4 = vmax.f32 %v915_v56, %v383_v49  ;;  %v955_v8 = vmax.f32 %v954_v60, %v421_v55  ;;  %v333_v19 = vld [vmem:[%s1613_s23 + $0x4d8] sm:$0xff]  ;;  %v424_v27 = vld [vmem:[%s1613_s23 + $0x7b0] sm:$0xff]  ;;  %v530_v42 = vld [vmem:[%s1613_s23 + $0xb00] sm:$0xff] }
  0x8c   : > { %v896_v29 = vmax.f32 %v895_v18, %v364_v6  ;;  %v859_v41 = vmax.f32 %v858_v31, %v328_v24  ;;  %v1010_v5 = vmax.f32 %v1009_v57, %v474_v50  ;;  %v438_v6 = vld [vmem:[%s1613_s23 + $0x820] sm:$0xff]  ;;  %v1505_v18 = vmov -inf   ;;  %v335_v31 = vld [vmem:[%s1613_s23 + $0x4e8] sm:$0xff]  ;;  %v425_v32 = vld [vmem:[%s1613_s23 + $0x7b8] sm:$0xff] }
  0x8d   : > { %v972_v11 = vmax.f32 %v971_v63, %v437_v58  ;;  %v917_v15 = vmax.f32 %v916_v4, %v384_v61  ;;  %164 = vst.msk [vmem:[%s1863_s26 + $0x10] sm:$0xff] %vm161_vm0, %v1505_v18  ;;  %162 = vst.msk [vmem:[%s1863_s26] sm:$0xff] %vm161_vm0, %v1505_v18  ;;  %v956_v20 = vmax.f32 %v955_v8, %v422_v3  ;;  %v388_v38 = vld [vmem:[%s1613_s23 + $0x690] sm:$0xff]  ;;  %v479_v44 = vld [vmem:[%s1613_s23 + $0x968] sm:$0xff] }
  0x8e   : > { %v897_v40 = vmax.f32 %v896_v29, %v365_v17  ;;  %v860_v54 = vmax.f32 %v859_v41, %v329_v30  ;;  %v1011_v16 = vmax.f32 %v1010_v5, %v475_v62  ;;  %v439_v17 = vld [vmem:[%s1613_s23 + $0x828] sm:$0xff]  ;;  %163 = vst.msk [vmem:[%s1863_s26 + $0x8] sm:$0xff] %vm161_vm0, %v1505_v18  ;;  %165 = vst.msk [vmem:[%s1863_s26 + $0x18] sm:$0xff] %vm161_vm0, %v1505_v18  ;;  %v440_v30 = vld [vmem:[%s1613_s23 + $0x830] sm:$0xff] }
  0x8f   : > { %166 = vst.msk [vmem:[%s1863_s26 + $0x20] sm:$0xff] %vm161_vm0, %v1505_v18  ;;  %167 = vst.msk [vmem:[%s1863_s26 + $0x28] sm:$0xff] %vm161_vm0, %v1505_v18  ;;  %v973_v23 = vmax.f32 %v972_v11, %v438_v6  ;;  %v957_v33 = vmax.f32 %v956_v20, %v423_v14  ;;  %v441_v41 = vld [vmem:[%s1613_s23 + $0x838] sm:$0xff]  ;;  %v531_v46 = vld [vmem:[%s1613_s23 + $0xb08] sm:$0xff] }
  0x90   : > { %v898_v53 = vmax.f32 %v897_v40, %v366_v28  ;;  %v861_v2 = vmax.f32 %v860_v54, %v330_v47  ;;  %168 = vst.msk [vmem:[%s1863_s26 + $0x30] sm:$0xff] %vm161_vm0, %v1505_v18  ;;  %169 = vst.msk [vmem:[%s1863_s26 + $0x38] sm:$0xff] %vm161_vm0, %v1505_v18  ;;  %v918_v28 = vmax.f32 %v917_v15, %v385_v9  ;;  %v532_v47 = vld [vmem:[%s1613_s23 + $0xb10] sm:$0xff]  ;;  %v426_v50 = vld [vmem:[%s1613_s23 + $0x7c0] sm:$0xff] }
  0x91   : > { %170 = vst.msk [vmem:[%s1863_s26 + $0x40] sm:$0xff] %vm161_vm0, %v1505_v18  ;;  %171 = vst.msk [vmem:[%s1863_s26 + $0x48] sm:$0xff] %vm161_vm0, %v1505_v18  ;;  %v1012_v29 = vmax.f32 %v1011_v16, %v476_v10  ;;  %v974_v36 = vmax.f32 %v973_v23, %v439_v17  ;;  %v958_v43 = vmax.f32 %v957_v33, %v424_v27  ;;  %v336_v48 = vld [vmem:[%s1613_s23 + $0x4f0] sm:$0xff]  ;;  %v389_v56 = vld [vmem:[%s1613_s23 + $0x698] sm:$0xff] }
  0x92   : > { %v899_v1 = vmax.f32 %v898_v53, %v367_v35  ;;  %v862_v13 = vmax.f32 %v861_v2, %v331_v59  ;;  %172 = vst.msk [vmem:[%s1863_s26 + $0x50] sm:$0xff] %vm161_vm0, %v1505_v18  ;;  %173 = vst.msk [vmem:[%s1863_s26 + $0x58] sm:$0xff] %vm161_vm0, %v1505_v18  ;;  %v478_v35 = vld [vmem:[%s1613_s23 + $0x960] sm:$0xff]  ;;  %v919_v39 = vmax.f32 %v918_v28, %v386_v21  ;;  %v480_v57 = vld [vmem:[%s1613_s23 + $0x970] sm:$0xff] }
  0x93   : > { %174 = vst.msk [vmem:[%s1863_s26 + $0x60] sm:$0xff] %vm161_vm0, %v1505_v18  ;;  %175 = vst.msk [vmem:[%s1863_s26 + $0x68] sm:$0xff] %vm161_vm0, %v1505_v18  ;;  %v1013_v40 = vmax.f32 %v1012_v29, %v477_v22  ;;  %v975_v45 = vmax.f32 %v974_v36, %v440_v30  ;;  %v442_v53 = vld [vmem:[%s1613_s23 + $0x840] sm:$0xff]  ;;  %v1069_v54 = vmax.f32 %v530_v42, %v531_v46  ;;  %v533_v59 = vld [vmem:[%s1613_s23 + $0xb18] sm:$0xff] }
  0x94   : > { %v900_v12 = vmax.f32 %v899_v1, %v368_v52  ;;  %176 = vst.msk [vmem:[%s1863_s26 + $0x70] sm:$0xff] %vm161_vm0, %v1505_v18  ;;  %177 = vst.msk [vmem:[%s1863_s26 + $0x78] sm:$0xff] %vm161_vm0, %v1505_v18  ;;  %v863_v26 = vmax.f32 %v862_v13, %v332_v7  ;;  %v920_v51 = vmax.f32 %v919_v39, %v387_v34  ;;  %v337_v60 = vld [vmem:[%s1613_s23 + $0x4f8] sm:$0xff]  ;;  %v427_v62 = vld [vmem:[%s1613_s23 + $0x7c8] sm:$0xff] }
  0x95   : > { %v1014_v52 = vmax.f32 %v1013_v40, %v478_v35  ;;  %v959_v55 = vmax.f32 %v958_v43, %v425_v32  ;;  %v976_v58 = vmax.f32 %v975_v45, %v441_v41  ;;  %v443_v1 = vld [vmem:[%s1613_s23 + $0x848] sm:$0xff]  ;;  %v1070_v2 = vmax.f32 %v1069_v54, %v532_v47  ;;  %v390_v4 = vld [vmem:[%s1613_s23 + $0x6a0] sm:$0xff]  ;;  %v481_v5 = vld [vmem:[%s1613_s23 + $0x978] sm:$0xff] }
  0x96   : > { %v901_v24 = vmax.f32 %v900_v12, %v369_v0  ;;  %v864_v37 = vmax.f32 %v863_v26, %v333_v19  ;;  %v921_v63 = vmax.f32 %v920_v51, %v388_v38  ;;  %v534_v7 = vld [vmem:[%s1613_s23 + $0xb20] sm:$0xff]  ;;  %v428_v9 = vld [vmem:[%s1613_s23 + $0x7d0] sm:$0xff]  ;;  %v391_v15 = vld [vmem:[%s1613_s23 + $0x6a8] sm:$0xff] }
  0x97   : > { %v1015_v0 = vmax.f32 %v1014_v52, %v479_v44  ;;  %v960_v3 = vmax.f32 %v959_v55, %v426_v50  ;;  %v977_v6 = vmax.f32 %v976_v58, %v442_v53  ;;  %v444_v12 = vld [vmem:[%s1613_s23 + $0x850] sm:$0xff]  ;;  %v1071_v13 = vmax.f32 %v1070_v2, %v533_v59  ;;  %v482_v16 = vld [vmem:[%s1613_s23 + $0x980] sm:$0xff]  ;;  %v535_v18 = vld [vmem:[%s1613_s23 + $0xb28] sm:$0xff] }
  0x98   : > { %902 = vmax.xlane.f32.xlu1 %v901_v24  ;;  %v865_v49 = vmax.f32 %v864_v37, %v334_v25  ;;  %v922_v10 = vmax.f32 %v921_v63, %v389_v56  ;;  %v429_v20 = vld [vmem:[%s1613_s23 + $0x7d8] sm:$0xff]  ;;  %v430_v21 = vld [vmem:[%s1613_s23 + $0x7e0] sm:$0xff]  ;;  %v392_v27 = vld [vmem:[%s1613_s23 + $0x6b0] sm:$0xff] }
  0x99   : > { %v1016_v11 = vmax.f32 %v1015_v0, %v480_v57  ;;  %v961_v14 = vmax.f32 %v960_v3, %v427_v62  ;;  %v978_v17 = vmax.f32 %v977_v6, %v443_v1  ;;  %v445_v24 = vld [vmem:[%s1613_s23 + $0x858] sm:$0xff]  ;;  %v1072_v25 = vmax.f32 %v1071_v13, %v534_v7  ;;  %v483_v28 = vld [vmem:[%s1613_s23 + $0x988] sm:$0xff]  ;;  %v536_v30 = vld [vmem:[%s1613_s23 + $0xb30] sm:$0xff] }
  0x9a   : > { %v866_v61 = vmax.f32 %v865_v49, %v335_v31  ;;  %v923_v22 = vmax.f32 %v922_v10, %v390_v4  ;;  %v431_v31 = vld [vmem:[%s1613_s23 + $0x7e8] sm:$0xff]  ;;  %v393_v32 = vld [vmem:[%s1613_s23 + $0x6b8] sm:$0xff]  ;;  %v484_v34 = vld [vmem:[%s1613_s23 + $0x990] sm:$0xff] }
  0x9b   : > { %v1017_v23 = vmax.f32 %v1016_v11, %v481_v5  ;;  %v962_v26 = vmax.f32 %v961_v14, %v428_v9  ;;  %v979_v29 = vmax.f32 %v978_v17, %v444_v12  ;;  %v446_v36 = vld [vmem:[%s1613_s23 + $0x860] sm:$0xff]  ;;  %v1073_v37 = vmax.f32 %v1072_v25, %v535_v18  ;;  %v537_v40 = vld [vmem:[%s1613_s23 + $0xb38] sm:$0xff]  ;;  %v499_v42 = vld [vmem:[%s1613_s23 + $0xa08] sm:$0xff] }
  0x9c   : > { %v867_v8 = vmax.f32 %v866_v61, %v336_v48  ;;  %v924_v33 = vmax.f32 %v923_v22, %v391_v15  ;;  %v498_v41 = vld [vmem:[%s1613_s23 + $0xa00] sm:$0xff]  ;;  %v447_v46 = vld [vmem:[%s1613_s23 + $0x868] sm:$0xff]  ;;  %v500_v48 = vld [vmem:[%s1613_s23 + $0xa10] sm:$0xff] }
  0x9d   : > { %v1018_v35 = vmax.f32 %v1017_v23, %v482_v16  ;;  %v963_v38 = vmax.f32 %v962_v26, %v429_v20  ;;  %v980_v39 = vmax.f32 %v979_v29, %v445_v24  ;;  %v394_v43 = vld [vmem:[%s1613_s23 + $0x6c0] sm:$0xff]  ;;  %v1074_v47 = vmax.f32 %v1073_v37, %v536_v30  ;;  %v485_v51 = vld [vmem:[%s1613_s23 + $0x998] sm:$0xff]  ;;  %v432_v55 = vld [vmem:[%s1613_s23 + $0x7f0] sm:$0xff] }
  0x9e   : > { %v868_v19 = vmax.f32 %v867_v8, %v337_v60  ;;  %v925_v44 = vmax.f32 %v924_v33, %v392_v27  ;;  %v1036_v49 = vmax.f32 %v498_v41, %v499_v42  ;;  %v538_v53 = vld [vmem:[%s1613_s23 + $0xb40] sm:$0xff]  ;;  %v501_v54 = vld [vmem:[%s1613_s23 + $0xa18] sm:$0xff]  ;;  %v395_v56 = vld [vmem:[%s1613_s23 + $0x6c8] sm:$0xff] }
  0x9f   : > { %v1019_v45 = vmax.f32 %v1018_v35, %v483_v28  ;;  %v964_v50 = vmax.f32 %v963_v38, %v430_v21  ;;  %v981_v52 = vmax.f32 %v980_v39, %v446_v36  ;;  %v448_v59 = vld [vmem:[%s1613_s23 + $0x870] sm:$0xff]  ;;  %v1075_v60 = vmax.f32 %v1074_v47, %v537_v40  ;;  %v486_v63 = vld [vmem:[%s1613_s23 + $0x9a0] sm:$0xff]  ;;  %v539_v1 = vld [vmem:[%s1613_s23 + $0xb48] sm:$0xff] }
  0xa0   : > { %869 = vmax.xlane.f32.xlu0 %v868_v19  ;;  %v926_v57 = vmax.f32 %v925_v44, %v393_v32  ;;  %v1037_v61 = vmax.f32 %v1036_v49, %v500_v48  ;;  %v502_v2 = vld [vmem:[%s1613_s23 + $0xa20] sm:$0xff]  ;;  %v433_v3 = vld [vmem:[%s1613_s23 + $0x7f8] sm:$0xff]  ;;  %v396_v4 = vld [vmem:[%s1613_s23 + $0x6d0] sm:$0xff] }
  0xa1   : > { %v1020_v58 = vmax.f32 %v1019_v45, %v484_v34  ;;  %v965_v62 = vmax.f32 %v964_v50, %v431_v31  ;;  %v982_v0 = vmax.f32 %v981_v52, %v447_v46  ;;  %v449_v7 = vld [vmem:[%s1613_s23 + $0x878] sm:$0xff]  ;;  %v1076_v8 = vmax.f32 %v1075_v60, %v538_v53  ;;  %v487_v11 = vld [vmem:[%s1613_s23 + $0x9a8] sm:$0xff]  ;;  %v540_v13 = vld [vmem:[%s1613_s23 + $0xb50] sm:$0xff] }
  0xa2   : > { %v927_v5 = vmax.f32 %v926_v57, %v394_v43  ;;  %v1038_v9 = vmax.f32 %v1037_v61, %v501_v54  ;;  %v503_v14 = vld [vmem:[%s1613_s23 + $0xa28] sm:$0xff]  ;;  %v397_v15 = vld [vmem:[%s1613_s23 + $0x6d8] sm:$0xff]  ;;  %v450_v18 = vld [vmem:[%s1613_s23 + $0x880] sm:$0xff] }
  0xa3   : > { %v1021_v6 = vmax.f32 %v1020_v58, %v485_v51  ;;  %v966_v10 = vmax.f32 %v965_v62, %v432_v55  ;;  %v983_v12 = vmax.f32 %v982_v0, %v448_v59  ;;  %v1077_v19 = vmax.f32 %v1076_v8, %v539_v1  ;;  %v488_v22 = vld [vmem:[%s1613_s23 + $0x9b0] sm:$0xff]  ;;  %v541_v24 = vld [vmem:[%s1613_s23 + $0xb58] sm:$0xff]  ;;  %v398_v26 = vld [vmem:[%s1613_s23 + $0x6e0] sm:$0xff] }
  0xa4   : > { %v928_v16 = vmax.f32 %v927_v5, %v395_v56  ;;  %v1039_v20 = vmax.f32 %v1038_v9, %v502_v2  ;;  %v504_v25 = vld [vmem:[%s1613_s23 + $0xa30] sm:$0xff]  ;;  %v489_v28 = vld [vmem:[%s1613_s23 + $0x9b8] sm:$0xff]  ;;  %v451_v30 = vld [vmem:[%s1613_s23 + $0x888] sm:$0xff] }
  0xa5   : > { %v1022_v17 = vmax.f32 %v1021_v6, %v486_v63  ;;  %v967_v21 = vmax.f32 %v966_v10, %v433_v3  ;;  %v984_v23 = vmax.f32 %v983_v12, %v449_v7  ;;  %v1078_v31 = vmax.f32 %v1077_v19, %v540_v13  ;;  %v399_v33 = vld [vmem:[%s1613_s23 + $0x6e8] sm:$0xff]  ;;  %v452_v34 = vld [vmem:[%s1613_s23 + $0x890] sm:$0xff]  ;;  %v542_v36 = vld [vmem:[%s1613_s23 + $0xb60] sm:$0xff] }
  0xa6   : > { %v929_v27 = vmax.f32 %v928_v16, %v396_v4  ;;  %v1040_v32 = vmax.f32 %v1039_v20, %v503_v14  ;;  %v505_v37 = vld [vmem:[%s1613_s23 + $0xa38] sm:$0xff]  ;;  %v594_v42 = vld [vmem:[%s1613_s23 + $0xd00] sm:$0xff]  ;;  %v595_v43 = vld [vmem:[%s1613_s23 + $0xd08] sm:$0xff] }
  0xa7   : > { %v1023_v29 = vmax.f32 %v1022_v17, %v487_v11  ;;  %968 = vmax.xlane.f32.xlu1 %v967_v21  ;;  %v985_v35 = vmax.f32 %v984_v23, %v450_v18  ;;  %v1079_v40 = vmax.f32 %v1078_v31, %v541_v24  ;;  %v596_v44 = vld [vmem:[%s1613_s23 + $0xd10] sm:$0xff]  ;;  %v490_v45 = vld [vmem:[%s1613_s23 + $0x9c0] sm:$0xff]  ;;  %v543_v47 = vld [vmem:[%s1613_s23 + $0xb68] sm:$0xff]  ;;  %v1135_v49 = vmax.f32 %v594_v42, %v595_v43 }
  0xa8   : > { %v930_v38 = vmax.f32 %v929_v27, %v397_v15  ;;  %v1041_v41 = vmax.f32 %v1040_v32, %v504_v25  ;;  %v506_v48 = vld [vmem:[%s1613_s23 + $0xa40] sm:$0xff]  ;;  %v400_v50 = vld [vmem:[%s1613_s23 + $0x6f0] sm:$0xff]  ;;  %v453_v53 = vld [vmem:[%s1613_s23 + $0x898] sm:$0xff] }
  0xa9   : > { %v1024_v39 = vmax.f32 %v1023_v29, %v488_v22  ;;  %v986_v46 = vmax.f32 %v985_v35, %v451_v30  ;;  %v1080_v54 = vmax.f32 %v1079_v40, %v542_v36  ;;  %v597_v56 = vld [vmem:[%s1613_s23 + $0xd18] sm:$0xff]  ;;  %v491_v57 = vld [vmem:[%s1613_s23 + $0x9c8] sm:$0xff]  ;;  %v544_v59 = vld [vmem:[%s1613_s23 + $0xb70] sm:$0xff]  ;;  %v1136_v61 = vmax.f32 %v1135_v49, %v596_v44 }
  0xaa   : > { %v931_v51 = vmax.f32 %v930_v38, %v398_v26  ;;  %v1042_v55 = vmax.f32 %v1041_v41, %v505_v37  ;;  %v507_v60 = vld [vmem:[%s1613_s23 + $0xa48] sm:$0xff]  ;;  %v401_v62 = vld [vmem:[%s1613_s23 + $0x6f8] sm:$0xff]  ;;  %v454_v1 = vld [vmem:[%s1613_s23 + $0x8a0] sm:$0xff] }
  0xab   : > { %v1025_v52 = vmax.f32 %v1024_v39, %v489_v28  ;;  %v987_v58 = vmax.f32 %v986_v46, %v452_v34  ;;  %v1081_v2 = vmax.f32 %v1080_v54, %v543_v47  ;;  %v598_v4 = vld [vmem:[%s1613_s23 + $0xd20] sm:$0xff]  ;;  %v492_v5 = vld [vmem:[%s1613_s23 + $0x9d0] sm:$0xff]  ;;  %v545_v7 = vld [vmem:[%s1613_s23 + $0xb78] sm:$0xff]  ;;  %v1137_v9 = vmax.f32 %v1136_v61, %v597_v56 }
  0xac   : > { %v932_v63 = vmax.f32 %v931_v51, %v399_v33  ;;  %v1043_v3 = vmax.f32 %v1042_v55, %v506_v48  ;;  %v508_v8 = vld [vmem:[%s1613_s23 + $0xa50] sm:$0xff]  ;;  %v455_v12 = vld [vmem:[%s1613_s23 + $0x8a8] sm:$0xff]  ;;  %v493_v16 = vld [vmem:[%s1613_s23 + $0x9d8] sm:$0xff] }
  0xad   : > { %v1026_v0 = vmax.f32 %v1025_v52, %v490_v45  ;;  %v988_v6 = vmax.f32 %v987_v58, %v453_v53  ;;  %v1082_v13 = vmax.f32 %v1081_v2, %v544_v59  ;;  %v599_v15 = vld [vmem:[%s1613_s23 + $0xd28] sm:$0xff]  ;;  %v546_v18 = vld [vmem:[%s1613_s23 + $0xb80] sm:$0xff]  ;;  %v509_v19 = vld [vmem:[%s1613_s23 + $0xa58] sm:$0xff]  ;;  %v1138_v20 = vmax.f32 %v1137_v9, %v598_v4 }
  0xae   : > { %v933_v10 = vmax.f32 %v932_v63, %v400_v50  ;;  %v1044_v14 = vmax.f32 %v1043_v3, %v507_v60  ;;  %v494_v22 = vld [vmem:[%s1613_s23 + $0x9e0] sm:$0xff]  ;;  %v456_v24 = vld [vmem:[%s1613_s23 + $0x8b0] sm:$0xff]  ;;  %v495_v28 = vld [vmem:[%s1613_s23 + $0x9e8] sm:$0xff] }
  0xaf   : > { %v1027_v11 = vmax.f32 %v1026_v0, %v491_v57  ;;  %v989_v17 = vmax.f32 %v988_v6, %v454_v1  ;;  %v1083_v25 = vmax.f32 %v1082_v13, %v545_v7  ;;  %v600_v27 = vld [vmem:[%s1613_s23 + $0xd30] sm:$0xff]  ;;  %v457_v29 = vld [vmem:[%s1613_s23 + $0x8b8] sm:$0xff]  ;;  %v547_v31 = vld [vmem:[%s1613_s23 + $0xb88] sm:$0xff]  ;;  %v1139_v33 = vmax.f32 %v1138_v20, %v599_v15 }
  0xb0   : > { %v934_v21 = vmax.f32 %v933_v10, %v401_v62  ;;  %v1045_v26 = vmax.f32 %v1044_v14, %v508_v8  ;;  %v510_v32 = vld [vmem:[%s1613_s23 + $0xa60] sm:$0xff]  ;;  %v548_v35 = vld [vmem:[%s1613_s23 + $0xb90] sm:$0xff]  ;;  %v601_v38 = vld [vmem:[%s1613_s23 + $0xd38] sm:$0xff] }
  0xb1   : > { %v1028_v23 = vmax.f32 %v1027_v11, %v492_v5  ;;  %v990_v30 = vmax.f32 %v989_v17, %v455_v12  ;;  %v1084_v36 = vmax.f32 %v1083_v25, %v546_v18  ;;  %v562_v39 = vld [vmem:[%s1613_s23 + $0xc00] sm:$0xff]  ;;  %v511_v41 = vld [vmem:[%s1613_s23 + $0xa68] sm:$0xff]  ;;  %v1140_v42 = vmax.f32 %v1139_v33, %v600_v27  ;;  %v564_v44 = vld [vmem:[%s1613_s23 + $0xc10] sm:$0xff] }
  0xb2   : > { %935 = vmax.xlane.f32.xlu0 %v934_v21  ;;  %v1046_v37 = vmax.f32 %v1045_v26, %v509_v19  ;;  %v563_v43 = vld [vmem:[%s1613_s23 + $0xc08] sm:$0xff]  ;;  %v496_v45 = vld [vmem:[%s1613_s23 + $0x9f0] sm:$0xff]  ;;  %v458_v47 = vld [vmem:[%s1613_s23 + $0x8c0] sm:$0xff] }
  0xb3   : > { %v1029_v34 = vmax.f32 %v1028_v23, %v493_v16  ;;  %v991_v40 = vmax.f32 %v990_v30, %v456_v24  ;;  %v1085_v48 = vmax.f32 %v1084_v36, %v547_v31  ;;  %v602_v50 = vld [vmem:[%s1613_s23 + $0xd40] sm:$0xff]  ;;  %v1102_v51 = vmax.f32 %v562_v39, %v563_v43  ;;  %v549_v53 = vld [vmem:[%s1613_s23 + $0xb98] sm:$0xff]  ;;  %v512_v54 = vld [vmem:[%s1613_s23 + $0xa70] sm:$0xff] }
  0xb4   : > { %v1047_v49 = vmax.f32 %v1046_v37, %v510_v32  ;;  %v1141_v55 = vmax.f32 %v1140_v42, %v601_v38  ;;  %v565_v56 = vld [vmem:[%s1613_s23 + $0xc18] sm:$0xff]  ;;  %v459_v59 = vld [vmem:[%s1613_s23 + $0x8c8] sm:$0xff]  ;;  %v550_v1 = vld [vmem:[%s1613_s23 + $0xba0] sm:$0xff] }
  0xb5   : > { %v1030_v46 = vmax.f32 %v1029_v34, %v494_v22  ;;  %v992_v52 = vmax.f32 %v991_v40, %v457_v29  ;;  %v497_v57 = vld [vmem:[%s1613_s23 + $0x9f8] sm:$0xff]  ;;  %v1086_v60 = vmax.f32 %v1085_v48, %v548_v35  ;;  %v603_v62 = vld [vmem:[%s1613_s23 + $0xd48] sm:$0xff]  ;;  %v1103_v63 = vmax.f32 %v1102_v51, %v564_v44  ;;  %v566_v4 = vld [vmem:[%s1613_s23 + $0xc20] sm:$0xff] }
  0xb6   : > { %v1048_v61 = vmax.f32 %v1047_v49, %v511_v41  ;;  %v513_v2 = vld [vmem:[%s1613_s23 + $0xa78] sm:$0xff]  ;;  %v1142_v3 = vmax.f32 %v1141_v55, %v602_v50  ;;  %v460_v6 = vld [vmem:[%s1613_s23 + $0x8d0] sm:$0xff]  ;;  %v551_v12 = vld [vmem:[%s1613_s23 + $0xba8] sm:$0xff] }
  0xb7   : > { %v1031_v58 = vmax.f32 %v1030_v46, %v495_v28  ;;  %v993_v0 = vmax.f32 %v992_v52, %v458_v47  ;;  %v1087_v7 = vmax.f32 %v1086_v60, %v549_v53  ;;  %v604_v9 = vld [vmem:[%s1613_s23 + $0xd50] sm:$0xff]  ;;  %v1104_v10 = vmax.f32 %v1103_v63, %v565_v56  ;;  %v514_v13 = vld [vmem:[%s1613_s23 + $0xa80] sm:$0xff]  ;;  %v567_v15 = vld [vmem:[%s1613_s23 + $0xc28] sm:$0xff] }
  0xb8   : > { %v1049_v8 = vmax.f32 %v1048_v61, %v512_v54  ;;  %v1143_v14 = vmax.f32 %v1142_v3, %v603_v62  ;;  %v461_v17 = vld [vmem:[%s1613_s23 + $0x8d8] sm:$0xff]  ;;  %v462_v18 = vld [vmem:[%s1613_s23 + $0x8e0] sm:$0xff]  ;;  %v552_v24 = vld [vmem:[%s1613_s23 + $0xbb0] sm:$0xff] }
  0xb9   : > { %v1032_v5 = vmax.f32 %v1031_v58, %v496_v45  ;;  %v994_v11 = vmax.f32 %v993_v0, %v459_v59  ;;  %v1088_v19 = vmax.f32 %v1087_v7, %v550_v1  ;;  %v605_v21 = vld [vmem:[%s1613_s23 + $0xd58] sm:$0xff]  ;;  %v1105_v22 = vmax.f32 %v1104_v10, %v566_v4  ;;  %v515_v25 = vld [vmem:[%s1613_s23 + $0xa88] sm:$0xff]  ;;  %v568_v27 = vld [vmem:[%s1613_s23 + $0xc30] sm:$0xff] }
  0xba   : > { %v1050_v20 = vmax.f32 %v1049_v8, %v513_v2  ;;  %v1144_v26 = vmax.f32 %v1143_v14, %v604_v9  ;;  %v463_v28 = vld [vmem:[%s1613_s23 + $0x8e8] sm:$0xff]  ;;  %v553_v29 = vld [vmem:[%s1613_s23 + $0xbb8] sm:$0xff]  ;;  %v516_v31 = vld [vmem:[%s1613_s23 + $0xa90] sm:$0xff] }
  0xbb   : > { %v1033_v16 = vmax.f32 %v1032_v5, %v497_v57  ;;  %v995_v23 = vmax.f32 %v994_v11, %v460_v6  ;;  %v1089_v30 = vmax.f32 %v1088_v19, %v551_v12  ;;  %v606_v33 = vld [vmem:[%s1613_s23 + $0xd60] sm:$0xff]  ;;  %v1106_v34 = vmax.f32 %v1105_v22, %v567_v15  ;;  %v569_v37 = vld [vmem:[%s1613_s23 + $0xc38] sm:$0xff]  ;;  %v659_v39 = vld [vmem:[%s1613_s23 + $0xf08] sm:$0xff] }
  0xbc   : > { %v1051_v32 = vmax.f32 %v1050_v20, %v514_v13  ;;  %v1145_v36 = vmax.f32 %v1144_v26, %v605_v21  ;;  %v658_v38 = vld [vmem:[%s1613_s23 + $0xf00] sm:$0xff]  ;;  %v607_v43 = vld [vmem:[%s1613_s23 + $0xd68] sm:$0xff]  ;;  %v660_v45 = vld [vmem:[%s1613_s23 + $0xf10] sm:$0xff] }
  0xbd   : > { %1034 = vmax.xlane.f32.xlu1 %v1033_v16  ;;  %v996_v35 = vmax.f32 %v995_v23, %v461_v17  ;;  %v554_v40 = vld [vmem:[%s1613_s23 + $0xbc0] sm:$0xff]  ;;  %v1090_v41 = vmax.f32 %v1089_v30, %v552_v24  ;;  %v1107_v44 = vmax.f32 %v1106_v34, %v568_v27  ;;  %v1201_v46 = vmax.f32 %v658_v38, %v659_v39  ;;  %v517_v48 = vld [vmem:[%s1613_s23 + $0xa98] sm:$0xff]  ;;  %v464_v52 = vld [vmem:[%s1613_s23 + $0x8f0] sm:$0xff] }
  0xbe   : > { %v1052_v42 = vmax.f32 %v1051_v32, %v515_v25  ;;  %v1146_v49 = vmax.f32 %v1145_v36, %v606_v33  ;;  %v570_v50 = vld [vmem:[%s1613_s23 + $0xc40] sm:$0xff]  ;;  %v661_v51 = vld [vmem:[%s1613_s23 + $0xf18] sm:$0xff]  ;;  %v555_v53 = vld [vmem:[%s1613_s23 + $0xbc8] sm:$0xff] }
  0xbf   : > { %v997_v47 = vmax.f32 %v996_v35, %v462_v18  ;;  %v1091_v54 = vmax.f32 %v1090_v41, %v553_v29  ;;  %v608_v56 = vld [vmem:[%s1613_s23 + $0xd70] sm:$0xff]  ;;  %v1108_v57 = vmax.f32 %v1107_v44, %v569_v37  ;;  %v1202_v58 = vmax.f32 %v1201_v46, %v660_v45  ;;  %v518_v60 = vld [vmem:[%s1613_s23 + $0xaa0] sm:$0xff]  ;;  %v571_v62 = vld [vmem:[%s1613_s23 + $0xc48] sm:$0xff] }
  0xc0   : > { %v1053_v55 = vmax.f32 %v1052_v42, %v516_v31  ;;  %v1147_v61 = vmax.f32 %v1146_v49, %v607_v43  ;;  %v662_v63 = vld [vmem:[%s1613_s23 + $0xf20] sm:$0xff]  ;;  %v465_v0 = vld [vmem:[%s1613_s23 + $0x8f8] sm:$0xff]  ;;  %v556_v1 = vld [vmem:[%s1613_s23 + $0xbd0] sm:$0xff] }
  0xc1   : > { %v998_v59 = vmax.f32 %v997_v47, %v463_v28  ;;  %v1092_v2 = vmax.f32 %v1091_v54, %v554_v40  ;;  %v609_v4 = vld [vmem:[%s1613_s23 + $0xd78] sm:$0xff]  ;;  %v1109_v5 = vmax.f32 %v1108_v57, %v570_v50  ;;  %v1203_v6 = vmax.f32 %v1202_v58, %v661_v51  ;;  %v519_v8 = vld [vmem:[%s1613_s23 + $0xaa8] sm:$0xff]  ;;  %v572_v10 = vld [vmem:[%s1613_s23 + $0xc50] sm:$0xff] }
  0xc2   : > { %v1054_v3 = vmax.f32 %v1053_v55, %v517_v48  ;;  %v1148_v9 = vmax.f32 %v1147_v61, %v608_v56  ;;  %v663_v11 = vld [vmem:[%s1613_s23 + $0xf28] sm:$0xff]  ;;  %v557_v12 = vld [vmem:[%s1613_s23 + $0xbd8] sm:$0xff]  ;;  %v610_v15 = vld [vmem:[%s1613_s23 + $0xd80] sm:$0xff] }
  0xc3   : > { %v999_v7 = vmax.f32 %v998_v59, %v464_v52  ;;  %v1093_v13 = vmax.f32 %v1092_v2, %v555_v53  ;;  %v1110_v16 = vmax.f32 %v1109_v5, %v571_v62  ;;  %v1204_v17 = vmax.f32 %v1203_v6, %v662_v63  ;;  %v520_v19 = vld [vmem:[%s1613_s23 + $0xab0] sm:$0xff]  ;;  %v573_v21 = vld [vmem:[%s1613_s23 + $0xc58] sm:$0xff]  ;;  %v558_v23 = vld [vmem:[%s1613_s23 + $0xbe0] sm:$0xff] }
  0xc4   : > { %v1055_v14 = vmax.f32 %v1054_v3, %v518_v60  ;;  %v1149_v20 = vmax.f32 %v1148_v9, %v609_v4  ;;  %v664_v22 = vld [vmem:[%s1613_s23 + $0xf30] sm:$0xff]  ;;  %v521_v25 = vld [vmem:[%s1613_s23 + $0xab8] sm:$0xff]  ;;  %v611_v27 = vld [vmem:[%s1613_s23 + $0xd88] sm:$0xff] }
  0xc5   : > { %v1000_v18 = vmax.f32 %v999_v7, %v465_v0  ;;  %v1094_v24 = vmax.f32 %v1093_v13, %v556_v1  ;;  %v1111_v28 = vmax.f32 %v1110_v16, %v572_v10  ;;  %v1205_v29 = vmax.f32 %v1204_v17, %v663_v11  ;;  %v559_v30 = vld [vmem:[%s1613_s23 + $0xbe8] sm:$0xff]  ;;  %v612_v31 = vld [vmem:[%s1613_s23 + $0xd90] sm:$0xff]  ;;  %v574_v33 = vld [vmem:[%s1613_s23 + $0xc60] sm:$0xff] }
  0xc6   : > { %v1056_v26 = vmax.f32 %v1055_v14, %v519_v8  ;;  %v1150_v32 = vmax.f32 %v1149_v20, %v610_v15  ;;  %v665_v34 = vld [vmem:[%s1613_s23 + $0xf38] sm:$0xff]  ;;  %v626_v39 = vld [vmem:[%s1613_s23 + $0xe00] sm:$0xff]  ;;  %v627_v40 = vld [vmem:[%s1613_s23 + $0xe08] sm:$0xff] }
  0xc7   : > { %1001 = vmax.xlane.f32.xlu0 %v1000_v18  ;;  %v1095_v35 = vmax.f32 %v1094_v24, %v557_v12  ;;  %v1112_v37 = vmax.f32 %v1111_v28, %v573_v21  ;;  %v1206_v38 = vmax.f32 %v1205_v29, %v664_v22  ;;  %v628_v41 = vld [vmem:[%s1613_s23 + $0xe10] sm:$0xff]  ;;  %v522_v42 = vld [vmem:[%s1613_s23 + $0xac0] sm:$0xff]  ;;  %v575_v44 = vld [vmem:[%s1613_s23 + $0xc68] sm:$0xff]  ;;  %v1168_v46 = vmax.f32 %v626_v39, %v627_v40 }
  0xc8   : > { %v1057_v36 = vmax.f32 %v1056_v26, %v520_v19  ;;  %v1151_v43 = vmax.f32 %v1150_v32, %v611_v27  ;;  %v666_v45 = vld [vmem:[%s1613_s23 + $0xf40] sm:$0xff]  ;;  %v560_v47 = vld [vmem:[%s1613_s23 + $0xbf0] sm:$0xff]  ;;  %v613_v50 = vld [vmem:[%s1613_s23 + $0xd98] sm:$0xff] }
  0xc9   : > { %v1096_v48 = vmax.f32 %v1095_v35, %v558_v23  ;;  %v1113_v51 = vmax.f32 %v1112_v37, %v574_v33  ;;  %v1207_v52 = vmax.f32 %v1206_v38, %v665_v34  ;;  %v629_v53 = vld [vmem:[%s1613_s23 + $0xe18] sm:$0xff]  ;;  %v523_v54 = vld [vmem:[%s1613_s23 + $0xac8] sm:$0xff]  ;;  %v576_v56 = vld [vmem:[%s1613_s23 + $0xc70] sm:$0xff]  ;;  %v1169_v58 = vmax.f32 %v1168_v46, %v628_v41 }
  0xca   : > { %v1058_v49 = vmax.f32 %v1057_v36, %v521_v25  ;;  %v1152_v55 = vmax.f32 %v1151_v43, %v612_v31  ;;  %v667_v57 = vld [vmem:[%s1613_s23 + $0xf48] sm:$0xff]  ;;  %v561_v59 = vld [vmem:[%s1613_s23 + $0xbf8] sm:$0xff]  ;;  %v614_v62 = vld [vmem:[%s1613_s23 + $0xda0] sm:$0xff] }
  0xcb   : > { %v1097_v60 = vmax.f32 %v1096_v48, %v559_v30  ;;  %v1114_v63 = vmax.f32 %v1113_v51, %v575_v44  ;;  %v1208_v0 = vmax.f32 %v1207_v52, %v666_v45  ;;  %v630_v1 = vld [vmem:[%s1613_s23 + $0xe20] sm:$0xff]  ;;  %v524_v2 = vld [vmem:[%s1613_s23 + $0xad0] sm:$0xff]  ;;  %v577_v4 = vld [vmem:[%s1613_s23 + $0xc78] sm:$0xff]  ;;  %v1170_v6 = vmax.f32 %v1169_v58, %v629_v53 }
  0xcc   : > { %v1059_v61 = vmax.f32 %v1058_v49, %v522_v42  ;;  %v1153_v3 = vmax.f32 %v1152_v55, %v613_v50  ;;  %v668_v5 = vld [vmem:[%s1613_s23 + $0xf50] sm:$0xff]  ;;  %v615_v9 = vld [vmem:[%s1613_s23 + $0xda8] sm:$0xff]  ;;  %v525_v13 = vld [vmem:[%s1613_s23 + $0xad8] sm:$0xff] }
  0xcd   : > { %v1098_v7 = vmax.f32 %v1097_v60, %v560_v47  ;;  %v1115_v10 = vmax.f32 %v1114_v63, %v576_v56  ;;  %v1209_v11 = vmax.f32 %v1208_v0, %v667_v57  ;;  %v631_v12 = vld [vmem:[%s1613_s23 + $0xe28] sm:$0xff]  ;;  %v578_v15 = vld [vmem:[%s1613_s23 + $0xc80] sm:$0xff]  ;;  %v669_v16 = vld [vmem:[%s1613_s23 + $0xf58] sm:$0xff]  ;;  %v1171_v17 = vmax.f32 %v1170_v6, %v630_v1 }
  0xce   : > { %v1060_v8 = vmax.f32 %v1059_v61, %v523_v54  ;;  %v1154_v14 = vmax.f32 %v1153_v3, %v614_v62  ;;  %v616_v20 = vld [vmem:[%s1613_s23 + $0xdb0] sm:$0xff]  ;;  %v526_v24 = vld [vmem:[%s1613_s23 + $0xae0] sm:$0xff]  ;;  %v579_v26 = vld [vmem:[%s1613_s23 + $0xc88] sm:$0xff] }
  0xcf   : > { %v1099_v18 = vmax.f32 %v1098_v7, %v561_v59  ;;  %v1116_v21 = vmax.f32 %v1115_v10, %v577_v4  ;;  %v1210_v22 = vmax.f32 %v1209_v11, %v668_v5  ;;  %v632_v23 = vld [vmem:[%s1613_s23 + $0xe30] sm:$0xff]  ;;  %v670_v27 = vld [vmem:[%s1613_s23 + $0xf60] sm:$0xff]  ;;  %v1172_v28 = vmax.f32 %v1171_v17, %v631_v12  ;;  %v617_v30 = vld [vmem:[%s1613_s23 + $0xdb8] sm:$0xff] }
  0xd0   : > { %v1061_v19 = vmax.f32 %v1060_v8, %v524_v2  ;;  %v1155_v25 = vmax.f32 %v1154_v14, %v615_v9  ;;  %v633_v33 = vld [vmem:[%s1613_s23 + $0xe38] sm:$0xff]  ;;  %v527_v34 = vld [vmem:[%s1613_s23 + $0xae8] sm:$0xff]  ;;  %v580_v36 = vld [vmem:[%s1613_s23 + $0xc90] sm:$0xff] }
  0xd1   : > { %1100 = vmax.xlane.f32.xlu1 %v1099_v18  ;;  %v1117_v31 = vmax.f32 %v1116_v21, %v578_v15  ;;  %v1211_v32 = vmax.f32 %v1210_v22, %v669_v16  ;;  %v671_v37 = vld [vmem:[%s1613_s23 + $0xf68] sm:$0xff]  ;;  %v1173_v38 = vmax.f32 %v1172_v28, %v632_v23  ;;  %v618_v40 = vld [vmem:[%s1613_s23 + $0xdc0] sm:$0xff]  ;;  %v528_v44 = vld [vmem:[%s1613_s23 + $0xaf0] sm:$0xff] }
  0xd2   : > { %v1062_v29 = vmax.f32 %v1061_v19, %v525_v13  ;;  %v1156_v35 = vmax.f32 %v1155_v25, %v616_v20  ;;  %v634_v43 = vld [vmem:[%s1613_s23 + $0xe40] sm:$0xff]  ;;  %v581_v46 = vld [vmem:[%s1613_s23 + $0xc98] sm:$0xff]  ;;  %v672_v47 = vld [vmem:[%s1613_s23 + $0xf70] sm:$0xff] }
  0xd3   : > { %v1118_v41 = vmax.f32 %v1117_v31, %v579_v26  ;;  %v1212_v42 = vmax.f32 %v1211_v32, %v670_v27  ;;  %v1174_v48 = vmax.f32 %v1173_v38, %v633_v33  ;;  %v619_v50 = vld [vmem:[%s1613_s23 + $0xdc8] sm:$0xff]  ;;  %v529_v54 = vld [vmem:[%s1613_s23 + $0xaf8] sm:$0xff]  ;;  %v582_v56 = vld [vmem:[%s1613_s23 + $0xca0] sm:$0xff] }
  0xd4   : > { %v1063_v39 = vmax.f32 %v1062_v29, %v526_v24  ;;  %v1157_v45 = vmax.f32 %v1156_v35, %v617_v30  ;;  %v635_v53 = vld [vmem:[%s1613_s23 + $0xe48] sm:$0xff]  ;;  %v673_v57 = vld [vmem:[%s1613_s23 + $0xf78] sm:$0xff]  ;;  %v620_v60 = vld [vmem:[%s1613_s23 + $0xdd0] sm:$0xff] }
  0xd5   : > { %v1119_v51 = vmax.f32 %v1118_v41, %v580_v36  ;;  %v1213_v52 = vmax.f32 %v1212_v42, %v671_v37  ;;  %v1175_v58 = vmax.f32 %v1174_v48, %v634_v43  ;;  %v636_v63 = vld [vmem:[%s1613_s23 + $0xe50] sm:$0xff]  ;;  %v583_v1 = vld [vmem:[%s1613_s23 + $0xca8] sm:$0xff]  ;;  %v674_v2 = vld [vmem:[%s1613_s23 + $0xf80] sm:$0xff] }
  0xd6   : > { %v1064_v49 = vmax.f32 %v1063_v39, %v527_v34  ;;  %v1158_v55 = vmax.f32 %v1157_v45, %v618_v40  ;;  %v621_v5 = vld [vmem:[%s1613_s23 + $0xdd8] sm:$0xff]  ;;  %v584_v10 = vld [vmem:[%s1613_s23 + $0xcb0] sm:$0xff]  ;;  %v675_v11 = vld [vmem:[%s1613_s23 + $0xf88] sm:$0xff] }
  0xd7   : > { %v1120_v61 = vmax.f32 %v1119_v51, %v581_v46  ;;  %v1214_v62 = vmax.f32 %v1213_v52, %v672_v47  ;;  %v1176_v3 = vmax.f32 %v1175_v58, %v635_v53  ;;  %v637_v8 = vld [vmem:[%s1613_s23 + $0xe58] sm:$0xff]  ;;  %v622_v13 = vld [vmem:[%s1613_s23 + $0xde0] sm:$0xff]  ;;  %v676_v19 = vld [vmem:[%s1613_s23 + $0xf90] sm:$0xff] }
  0xd8   : > { %v1065_v59 = vmax.f32 %v1064_v49, %v528_v44  ;;  %v1159_v0 = vmax.f32 %v1158_v55, %v619_v50  ;;  %v638_v16 = vld [vmem:[%s1613_s23 + $0xe60] sm:$0xff]  ;;  %v585_v18 = vld [vmem:[%s1613_s23 + $0xcb8] sm:$0xff]  ;;  %v623_v21 = vld [vmem:[%s1613_s23 + $0xde8] sm:$0xff] }
  0xd9   : > { %v1121_v6 = vmax.f32 %v1120_v61, %v582_v56  ;;  %v1215_v7 = vmax.f32 %v1214_v62, %v673_v57  ;;  %v1177_v12 = vmax.f32 %v1176_v3, %v636_v63  ;;  %v639_v24 = vld [vmem:[%s1613_s23 + $0xe68] sm:$0xff]  ;;  %v586_v26 = vld [vmem:[%s1613_s23 + $0xcc0] sm:$0xff]  ;;  %v677_v27 = vld [vmem:[%s1613_s23 + $0xf98] sm:$0xff] }
  0xda   : > { %v1066_v4 = vmax.f32 %v1065_v59, %v529_v54  ;;  %v1160_v9 = vmax.f32 %v1159_v0, %v620_v60  ;;  %v624_v29 = vld [vmem:[%s1613_s23 + $0xdf0] sm:$0xff]  ;;  %v587_v34 = vld [vmem:[%s1613_s23 + $0xcc8] sm:$0xff]  ;;  %v678_v35 = vld [vmem:[%s1613_s23 + $0xfa0] sm:$0xff] }
  0xdb   : > { %v1122_v14 = vmax.f32 %v1121_v6, %v583_v1  ;;  %v1216_v15 = vmax.f32 %v1215_v7, %v674_v2  ;;  %v1178_v20 = vmax.f32 %v1177_v12, %v637_v8  ;;  %v640_v32 = vld [vmem:[%s1613_s23 + $0xe70] sm:$0xff]  ;;  %v625_v37 = vld [vmem:[%s1613_s23 + $0xdf8] sm:$0xff]  ;;  %v679_v43 = vld [vmem:[%s1613_s23 + $0xfa8] sm:$0xff] }
  0xdc   : > { %1067 = vmax.xlane.f32.xlu0 %v1066_v4  ;;  %v1161_v17 = vmax.f32 %v1160_v9, %v621_v5  ;;  %v641_v40 = vld [vmem:[%s1613_s23 + $0xe78] sm:$0xff]  ;;  %v588_v42 = vld [vmem:[%s1613_s23 + $0xcd0] sm:$0xff]  ;;  %v642_v47 = vld [vmem:[%s1613_s23 + $0xe80] sm:$0xff] }
  0xdd   : > { %v1123_v22 = vmax.f32 %v1122_v14, %v584_v10  ;;  %v1217_v23 = vmax.f32 %v1216_v15, %v675_v11  ;;  %v1179_v28 = vmax.f32 %v1178_v20, %v638_v16  ;;  %v589_v49 = vld [vmem:[%s1613_s23 + $0xcd8] sm:$0xff]  ;;  %v680_v50 = vld [vmem:[%s1613_s23 + $0xfb0] sm:$0xff]  ;;  %v643_v54 = vld [vmem:[%s1613_s23 + $0xe88] sm:$0xff] }
  0xde   : > { %v1162_v25 = vmax.f32 %v1161_v17, %v622_v13  ;;  %v590_v55 = vld [vmem:[%s1613_s23 + $0xce0] sm:$0xff]  ;;  %v681_v56 = vld [vmem:[%s1613_s23 + $0xfb8] sm:$0xff]  ;;  %v644_v60 = vld [vmem:[%s1613_s23 + $0xe90] sm:$0xff] }
  0xdf   : > { %v1124_v30 = vmax.f32 %v1123_v22, %v585_v18  ;;  %v1218_v31 = vmax.f32 %v1217_v23, %v676_v19  ;;  %v1180_v36 = vmax.f32 %v1179_v28, %v639_v24  ;;  %v591_v61 = vld [vmem:[%s1613_s23 + $0xce8] sm:$0xff]  ;;  %v682_v62 = vld [vmem:[%s1613_s23 + $0xfc0] sm:$0xff]  ;;  %v645_v2 = vld [vmem:[%s1613_s23 + $0xe98] sm:$0xff] }
  0xe0   : > { %v1163_v33 = vmax.f32 %v1162_v25, %v623_v21  ;;  %v592_v3 = vld [vmem:[%s1613_s23 + $0xcf0] sm:$0xff]  ;;  %v683_v4 = vld [vmem:[%s1613_s23 + $0xfc8] sm:$0xff]  ;;  %v646_v8 = vld [vmem:[%s1613_s23 + $0xea0] sm:$0xff] }
  0xe1   : > { %v1125_v38 = vmax.f32 %v1124_v30, %v586_v26  ;;  %v1219_v39 = vmax.f32 %v1218_v31, %v677_v27  ;;  %v1181_v44 = vmax.f32 %v1180_v36, %v640_v32  ;;  %v593_v9 = vld [vmem:[%s1613_s23 + $0xcf8] sm:$0xff]  ;;  %v684_v10 = vld [vmem:[%s1613_s23 + $0xfd0] sm:$0xff]  ;;  %v647_v14 = vld [vmem:[%s1613_s23 + $0xea8] sm:$0xff] }
  0xe2   : > { %v1164_v41 = vmax.f32 %v1163_v33, %v624_v29  ;;  %v685_v15 = vld [vmem:[%s1613_s23 + $0xfd8] sm:$0xff]  ;;  %v648_v19 = vld [vmem:[%s1613_s23 + $0xeb0] sm:$0xff]  ;;  %v686_v20 = vld [vmem:[%s1613_s23 + $0xfe0] sm:$0xff] }
  0xe3   : > { %v1126_v45 = vmax.f32 %v1125_v38, %v587_v34  ;;  %v1220_v46 = vmax.f32 %v1219_v39, %v678_v35  ;;  %v1182_v51 = vmax.f32 %v1181_v44, %v641_v40  ;;  %v649_v23 = vld [vmem:[%s1613_s23 + $0xeb8] sm:$0xff]  ;;  %v692_v24 = vld [vmem:[%s1863_s26 + $0x10] sm:$0xff]  ;;  %v687_v25 = vld [vmem:[%s1613_s23 + $0xfe8] sm:$0xff] }
  0xe4   : > { %v1165_v48 = vmax.f32 %v1164_v41, %v625_v37  ;;  %v650_v28 = vld [vmem:[%s1613_s23 + $0xec0] sm:$0xff]  ;;  %v688_v30 = vld [vmem:[%s1613_s23 + $0xff0] sm:$0xff]  ;;  %v651_v34 = vld [vmem:[%s1613_s23 + $0xec8] sm:$0xff] }
  0xe5   : > { %v1127_v52 = vmax.f32 %v1126_v45, %v588_v42  ;;  %v1221_v53 = vmax.f32 %v1220_v46, %v679_v43  ;;  %v1183_v57 = vmax.f32 %v1182_v51, %v642_v47  ;;  %v689_v35 = vld [vmem:[%s1613_s23 + $0xff8] sm:$0xff]  ;;  %v652_v38 = vld [vmem:[%s1613_s23 + $0xed0] sm:$0xff]  ;;  %v654_v43 = vld [vmem:[%s1613_s23 + $0xee0] sm:$0xff] }
  0xe6   : > { %1166 = vmax.xlane.f32.xlu1 %v1165_v48  ;;  %v653_v41 = vld [vmem:[%s1613_s23 + $0xed8] sm:$0xff]  ;;  %v690_v45 = vld [vmem:[%s1863_s26] sm:$0xff]  ;;  %v655_v46 = vld [vmem:[%s1613_s23 + $0xee8] sm:$0xff] }
  0xe7   : > { %v1128_v58 = vmax.f32 %v1127_v52, %v589_v49  ;;  %v1222_v59 = vmax.f32 %v1221_v53, %v680_v50  ;;  %v1184_v63 = vmax.f32 %v1183_v57, %v643_v54  ;;  %v656_v49 = vld [vmem:[%s1613_s23 + $0xef0] sm:$0xff]  ;;  %v657_v52 = vld [vmem:[%s1613_s23 + $0xef8] sm:$0xff] }
  0xe9   : > { %v1129_v0 = vmax.f32 %v1128_v58, %v590_v55  ;;  %v1223_v1 = vmax.f32 %v1222_v59, %v681_v56  ;;  %v1185_v5 = vmax.f32 %v1184_v63, %v644_v60  ;;  %v693_v55 = vld [vmem:[%s1863_s26 + $0x18] sm:$0xff]  ;;  %v691_v58 = vld [vmem:[%s1863_s26 + $0x8] sm:$0xff] }
  0xeb   : > { %v1130_v6 = vmax.f32 %v1129_v0, %v591_v61  ;;  %v1224_v7 = vmax.f32 %v1223_v1, %v682_v62  ;;  %v1186_v11 = vmax.f32 %v1185_v5, %v645_v2  ;;  %v695_v61 = vld [vmem:[%s1863_s26 + $0x28] sm:$0xff]  ;;  %v694_v0 = vld [vmem:[%s1863_s26 + $0x20] sm:$0xff] }
  0xed   : > { %v1131_v12 = vmax.f32 %v1130_v6, %v592_v3  ;;  %v1225_v13 = vmax.f32 %v1224_v7, %v683_v4  ;;  %v1187_v16 = vmax.f32 %v1186_v11, %v646_v8  ;;  %v697_v3 = vld [vmem:[%s1863_s26 + $0x38] sm:$0xff]  ;;  %v696_v6 = vld [vmem:[%s1863_s26 + $0x30] sm:$0xff] }
  0xef   : > { %v1132_v17 = vmax.f32 %v1131_v12, %v593_v9  ;;  %v1226_v18 = vmax.f32 %v1225_v13, %v684_v10  ;;  %v1188_v21 = vmax.f32 %v1187_v16, %v647_v14  ;;  %v699_v9 = vld [vmem:[%s1863_s26 + $0x48] sm:$0xff]  ;;  %v698_v12 = vld [vmem:[%s1863_s26 + $0x40] sm:$0xff] }
  0xf1   : > { %1133 = vmax.xlane.f32.xlu0 %v1132_v17  ;;  %v1227_v22 = vmax.f32 %v1226_v18, %v685_v15  ;;  %v1189_v26 = vmax.f32 %v1188_v21, %v648_v19  ;;  %v701_v15 = vld [vmem:[%s1863_s26 + $0x58] sm:$0xff]  ;;  %v700_v18 = vld [vmem:[%s1863_s26 + $0x50] sm:$0xff]  ;;  %v703_v21 = vld [vmem:[%s1863_s26 + $0x68] sm:$0xff] }
  0xf3   : > { %v1228_v27 = vmax.f32 %v1227_v22, %v686_v20  ;;  %v1190_v31 = vmax.f32 %v1189_v26, %v649_v23 }
  0xf5   : > { %v1229_v33 = vmax.f32 %v1228_v27, %v687_v25  ;;  %v1191_v36 = vmax.f32 %v1190_v31, %v650_v28  ;;  %v705_v27 = vld [vmem:[%s1863_s26 + $0x78] sm:$0xff] }
  0xf7   : > { %v1230_v37 = vmax.f32 %v1229_v33, %v688_v30  ;;  %v1192_v39 = vmax.f32 %v1191_v36, %v651_v34  ;;  %v704_v30 = vld [vmem:[%s1863_s26 + $0x70] sm:$0xff] }
  0xf9   : > { %v1231_v40 = vmax.f32 %v1230_v37, %v689_v35  ;;  %v1193_v42 = vmax.f32 %v1192_v39, %v652_v38 }
  0xfb   : > { %1232 = vmax.xlane.f32.xlu1 %v1231_v40  ;;  %v1194_v44 = vmax.f32 %v1193_v42, %v653_v41 }
  0xfd   : > { %v1195_v47 = vmax.f32 %v1194_v44, %v654_v43 }
  0xff   : > { %v804_v29 = vpop.xlane.xlu1 %803  ;;  %v1196_v51 = vmax.f32 %v1195_v47, %v655_v46 }
 0x100   : > { %v1236_v32 = vmax.f32 %v692_v24, %v804_v29  ;;  %v702_v24 = vld [vmem:[%s1863_s26 + $0x60] sm:$0xff] }
 0x101   : > { %v1197_v53 = vmax.f32 %v1196_v51, %v656_v49 }
 0x102   : > { %1253 = vst.msk [vmem:[%s1863_s26 + $0x10] sm:$0xff] %vm161_vm0, %v1236_v32  ;;  %v738_v48 = vpop.xlane.xlu0 %737 }
 0x103   : > { %v1234_v50 = vmax.f32 %v690_v45, %v738_v48  ;;  %v1198_v54 = vmax.f32 %v1197_v53, %v657_v52 }
 0x105   : > { %1251 = vst.msk [vmem:[%s1863_s26] sm:$0xff] %vm161_vm0, %v1234_v50  ;;  %1199 = vmax.xlane.f32.xlu0 %v1198_v54 }
 0x10c   : > { %v837_v56 = vpop.xlane.xlu1 %836 }
 0x10d   : > { %v1237_v57 = vmax.f32 %v693_v55, %v837_v56 }
 0x10f   : > { %1254 = vst.msk [vmem:[%s1863_s26 + $0x18] sm:$0xff] %vm161_vm0, %v1237_v57 }
 0x117   : > { %v771_v59 = vpop.xlane.xlu0 %770 }
 0x118   : > { %v1235_v60 = vmax.f32 %v691_v58, %v771_v59 }
 0x11a   : > { %1252 = vst.msk [vmem:[%s1863_s26 + $0x8] sm:$0xff] %vm161_vm0, %v1235_v60 }
 0x125   : > { %v903_v62 = vpop.xlane.xlu1 %902 }
 0x126   : > { %v1239_v63 = vmax.f32 %v695_v61, %v903_v62 }
 0x128   : > { %1256 = vst.msk [vmem:[%s1863_s26 + $0x28] sm:$0xff] %vm161_vm0, %v1239_v63 }
 0x12d   : > { %v870_v1 = vpop.xlane.xlu0 %869 }
 0x12e   : > { %v1238_v2 = vmax.f32 %v694_v0, %v870_v1 }
 0x130   : > { %1255 = vst.msk [vmem:[%s1863_s26 + $0x20] sm:$0xff] %vm161_vm0, %v1238_v2 }
 0x134   : > { %v969_v4 = vpop.xlane.xlu1 %968 }
 0x135   : > { %v1241_v5 = vmax.f32 %v697_v3, %v969_v4 }
 0x137   : > { %1258 = vst.msk [vmem:[%s1863_s26 + $0x38] sm:$0xff] %vm161_vm0, %v1241_v5 }
 0x13f   : > { %v936_v7 = vpop.xlane.xlu0 %935 }
 0x140   : > { %v1240_v8 = vmax.f32 %v696_v6, %v936_v7 }
 0x142   : > { %1257 = vst.msk [vmem:[%s1863_s26 + $0x30] sm:$0xff] %vm161_vm0, %v1240_v8 }
 0x14a   : > { %v1035_v10 = vpop.xlane.xlu1 %1034 }
 0x14b   : > { %v1243_v11 = vmax.f32 %v699_v9, %v1035_v10 }
 0x14d   : > { %1260 = vst.msk [vmem:[%s1863_s26 + $0x48] sm:$0xff] %vm161_vm0, %v1243_v11 }
 0x154   : > { %v1002_v13 = vpop.xlane.xlu0 %1001 }
 0x155   : > { %v1242_v14 = vmax.f32 %v698_v12, %v1002_v13 }
 0x157   : > { %1259 = vst.msk [vmem:[%s1863_s26 + $0x40] sm:$0xff] %vm161_vm0, %v1242_v14 }
 0x15e   : > { %v1101_v16 = vpop.xlane.xlu1 %1100 }
 0x15f   : > { %v1245_v17 = vmax.f32 %v701_v15, %v1101_v16 }
 0x161   : > { %1262 = vst.msk [vmem:[%s1863_s26 + $0x58] sm:$0xff] %vm161_vm0, %v1245_v17 }
 0x169   : > { %v1068_v19 = vpop.xlane.xlu0 %1067 }
 0x16a   : > { %v1244_v20 = vmax.f32 %v700_v18, %v1068_v19 }
 0x16c   : > { %1261 = vst.msk [vmem:[%s1863_s26 + $0x50] sm:$0xff] %vm161_vm0, %v1244_v20 }
 0x173   : > { %v1167_v22 = vpop.xlane.xlu1 %1166 }
 0x174   : > { %v1247_v23 = vmax.f32 %v703_v21, %v1167_v22 }
 0x176   : > { %1264 = vst.msk [vmem:[%s1863_s26 + $0x68] sm:$0xff] %vm161_vm0, %v1247_v23 }
 0x17e   : > { %v1134_v25 = vpop.xlane.xlu0 %1133 }
 0x17f   : > { %v1246_v26 = vmax.f32 %v702_v24, %v1134_v25 }
 0x181   : > { %1263 = vst.msk [vmem:[%s1863_s26 + $0x60] sm:$0xff] %vm161_vm0, %v1246_v26 }
 0x188   : > { %v1233_v28 = vpop.xlane.xlu1 %1232 }
 0x189   : > { %v1249_v29 = vmax.f32 %v705_v27, %v1233_v28 }
 0x18b   : > { %1266 = vst.msk [vmem:[%s1863_s26 + $0x78] sm:$0xff] %vm161_vm0, %v1249_v29 }
 0x192   : > { %v1200_v31 = vpop.xlane.xlu0 %1199 }
 0x193   : > { %v1248_v32 = vmax.f32 %v704_v30, %v1200_v31 }
 0x195   : > { %1265 = vst.msk [vmem:[%s1863_s26 + $0x70] sm:$0xff] %vm161_vm0, %v1248_v32 }
 0x196 PF: > { %s14_s11 = sadd.s32 1, %s1500_s11   ;;  %s2240_s6 = smov %s1484_s7 }
 0x197   : > { %p11_p9 = scmp.ge.s32.totalorder %s14_s11, 4   ;;  %s2241_s7 = smov %s1488_s8 }
 0x198   : > { %s2242_s8 = smov %s1565_s18  ;;  %s2243_s9 = smov %s1496_s10 }
 0x199   : > { %s2244_s10 = smov %s2246_s13  ;;  %13 = sbr.rel (!%p11_p9) target bundleno = 4 (0x4), region = 68 }
 0x1a0   :  { %1289 = vsyncpa [#allocation3], 1 }
 0x1a1   :  { %1291 = vsyncpa [#allocation3 + $0x1], 1 }

</bundles_post_ra>
